<compile_context>
chip_gen: v7x
topology: tpu7x:2x2x1
jax: 0.10.0
libtpu: 0.0.40
codegen_flags: <defaults>
</compile_context>

<pallas_src>
import functools

import jax
import jax.numpy as jnp
from jax.experimental import pallas as pl
from jax.experimental.pallas import tpu as pltpu


_INV_SQRT2 = 0.7071067811865475
_TM_PREF = 256          # preferred row tile for all 2-D matmul-style kernels


@functools.lru_cache(maxsize=None)
def _tuning():
    """Per-generation tile / VMEM budget. Conservative fallback is v7x-safe."""
    kind = ""
    try:
        kind = jax.devices()[0].device_kind.lower()
    except Exception:
        pass
    if ("v5" in kind) or ("v6" in kind):
        # 128 MiB physical VMEM, lower HBM BW: bigger tiles, higher limit.
        return {"vmem": 64 * 1024 * 1024, "tn": 1024, "tk": 1024}
    # v7x (64 MiB physical VMEM) and unknown generations.
    return {"vmem": 40 * 1024 * 1024, "tn": 512, "tk": 512}


def _round_up(x, m):
    return (x + m - 1) // m * m


def _pick_tile(dim, preferred, align):
    """Largest tile <= preferred that divides dim and is `align`-aligned.

    Small dims become one full block (always legal).  Because the token/M dim
    is padded to a multiple of 8 up front, the search always finds a sensible
    divisor for real ViT shapes instead of collapsing to 8.
    """
    if dim <= preferred:
        return dim
    t = (preferred // align) * align
    while t >= align:
        if dim % t == 0:
            return t
        t -= align
    return dim   # non-aligned dim: single full block


def _apply_act(x, activation):
    if activation == "gelu":
        # exact (erf-based) GELU, matching torch.nn.GELU default
        return 0.5 * x * (1.0 + jax.lax.erf(x * _INV_SQRT2))
    if activation == "tanh":
        return jnp.tanh(x)
    return x


# ---------------------------------------------------------------------------
# Kernels
# ---------------------------------------------------------------------------

def _ln_matmul_kernel(x_ref, g_ref, b_ref, w_ref, bias_ref, o_ref, xn_ref, *,
                      eps, activation):
    """o = act(LayerNorm(x) @ w + bias).

    LN (f32 stats) is computed ONCE per row tile (j == 0) into the bf16 VMEM
    scratch xn_ref and reused for every output column tile j.
    """
    j = pl.program_id(1)

    @pl.when(j == 0)
    def _():
        x = x_ref[...].astype(jnp.float32)
        mu = jnp.mean(x, axis=-1, keepdims=True)
        var = jnp.mean(jnp.square(x - mu), axis=-1, keepdims=True)
        xn = (x - mu) * jax.lax.rsqrt(var + eps)
        xn = xn * g_ref[...].astype(jnp.float32) + b_ref[...].astype(jnp.float32)
        xn_ref[...] = xn.astype(xn_ref.dtype)

    acc = jnp.dot(xn_ref[...], w_ref[...], preferred_element_type=jnp.float32)
    acc = acc + bias_ref[...].astype(jnp.float32)
    acc = _apply_act(acc, activation)
    o_ref[...] = acc.astype(o_ref.dtype)


def _matmul_kernel(x_ref, w_ref, bias_ref, o_ref, acc_ref, *, activation):
    """o = act(x @ w + bias), K-tiled with f32 accumulator scratch."""
    k = pl.program_id(2)

    @pl.when(k == 0)
    def _():
        acc_ref[...] = jnp.zeros_like(acc_ref)

    acc_ref[...] += jnp.dot(x_ref[...], w_ref[...],
                            preferred_element_type=jnp.float32)

    @pl.when(k == pl.num_programs(2) - 1)
    def _():
        out = acc_ref[...] + bias_ref[...].astype(jnp.float32)
        out = _apply_act(out, activation)
        o_ref[...] = out.astype(o_ref.dtype)


def _matmul_residual_kernel(x_ref, w_ref, bias_ref, res_ref, o_ref, acc_ref, *,
                            activation):
    """o = res + act(x @ w + bias); residual added in the last-K finalize."""
    k = pl.program_id(2)

    @pl.when(k == 0)
    def _():
        acc_ref[...] = jnp.zeros_like(acc_ref)

    acc_ref[...] += jnp.dot(x_ref[...], w_ref[...],
                            preferred_element_type=jnp.float32)

    @pl.when(k == pl.num_programs(2) - 1)
    def _():
        out = acc_ref[...] + bias_ref[...].astype(jnp.float32)
        out = _apply_act(out, activation)
        out = out + res_ref[...].astype(jnp.float32)
        o_ref[...] = out.astype(o_ref.dtype)


def _softmax_av(q, k, v, scale, key_mask, out_dtype):
    s = jnp.dot(q, k.T, preferred_element_type=jnp.float32) * scale
    if key_mask is not None:
        s = jnp.where(key_mask, s, -1e30)       # mask padded key columns
    s = s - jnp.max(s, axis=-1, keepdims=True)
    p = jnp.exp(s)
    p = p * pl.reciprocal(jnp.sum(p, axis=-1, keepdims=True), approx=True)
    return jnp.dot(p.astype(v.dtype), v,
                   preferred_element_type=jnp.float32).astype(out_dtype)


def _attn_slab_kernel(qkv_ref, o_ref, *, num_heads, scale, n_valid):
    """Per-batch MHA from the fused [n_pad, 3E] slab (q|k|v, head-major).

    Each head's result is stored directly into its lane slice of o_ref.
    """
    n_pad, three_e = qkv_ref.shape
    e = three_e // 3
    hd = e // num_heads
    qkv = qkv_ref[...]
    key_mask = None
    if n_valid < n_pad:
        key_mask = jax.lax.broadcasted_iota(jnp.int32, (1, n_pad), 1) < n_valid
    for h in range(num_heads):
        q = qkv[:, h * hd:(h + 1) * hd]
        k = qkv[:, e + h * hd:e + (h + 1) * hd]
        v = qkv[:, 2 * e + h * hd:2 * e + (h + 1) * hd]
        o_ref[:, h * hd:(h + 1) * hd] = _softmax_av(q, k, v, scale, key_mask,
                                                    o_ref.dtype)


def _attn_group_kernel(q_ref, k_ref, v_ref, o_ref, *, heads_per_group, scale,
                       n_valid):
    """Per-(batch, head-group) MHA: q/k/v arrive as 128-lane-aligned slices."""
    n_pad, gw = q_ref.shape
    hd = gw // heads_per_group
    q_all, k_all, v_all = q_ref[...], k_ref[...], v_ref[...]
    key_mask = None
    if n_valid < n_pad:
        key_mask = jax.lax.broadcasted_iota(jnp.int32, (1, n_pad), 1) < n_valid
    for h in range(heads_per_group):
        q = q_all[:, h * hd:(h + 1) * hd]
        k = k_all[:, h * hd:(h + 1) * hd]
        v = v_all[:, h * hd:(h + 1) * hd]
        o_ref[:, h * hd:(h + 1) * hd] = _softmax_av(q, k, v, scale, key_mask,
                                                    o_ref.dtype)


# ---------------------------------------------------------------------------
# Wrappers
# ---------------------------------------------------------------------------

def ln_matmul(x, gamma, beta, w, b, *, activation=None, eps=1e-6,
              out_dtype=None):
    """act(LayerNorm(x) @ w + b); x:[M,K], w:[K,N], gamma/beta:[K], b:[N]."""
    M, K = x.shape
    N = w.shape[1]
    out_dtype = out_dtype or x.dtype
    cfg = _tuning()
    tm = _pick_tile(M, _TM_PREF, 8)
    tn = _pick_tile(N, cfg["tn"], 128)
    kern = functools.partial(_ln_matmul_kernel, eps=eps, activation=activation)
    return pl.pallas_call(
        kern,
        out_shape=jax.ShapeDtypeStruct((M, N), out_dtype),
        grid=(M // tm, N // tn),
        in_specs=[
            pl.BlockSpec((tm, K), lambda i, j: (i, 0)),
            pl.BlockSpec((1, K), lambda i, j: (0, 0)),
            pl.BlockSpec((1, K), lambda i, j: (0, 0)),
            pl.BlockSpec((K, tn), lambda i, j: (0, j)),
            pl.BlockSpec((1, tn), lambda i, j: (0, j)),
        ],
        out_specs=pl.BlockSpec((tm, tn), lambda i, j: (i, j)),
        scratch_shapes=[pltpu.VMEM((tm, K), w.dtype)],   # hoisted LN result
        compiler_params=pltpu.CompilerParams(
            # j must be "arbitrary": the LN scratch is filled at j == 0.
            dimension_semantics=("parallel", "arbitrary"),
            vmem_limit_bytes=cfg["vmem"]),
    )(x, gamma.reshape(1, K), beta.reshape(1, K), w, b.reshape(1, N))


def matmul(x, w, b, *, residual=None, activation=None, out_dtype=None):
    """Tiled act(x @ w + b) [+ residual]; grid (M/tm, N/tn, K/tk)."""
    M, K = x.shape
    N = w.shape[1]
    out_dtype = out_dtype or x.dtype
    cfg = _tuning()
    tm = _pick_tile(M, _TM_PREF, 8)
    tn = _pick_tile(N, cfg["tn"], 128)
    tk = _pick_tile(K, cfg["tk"], 128)
    in_specs = [
        pl.BlockSpec((tm, tk), lambda i, j, k: (i, k)),
        # TODO(synk): on v5e sweep pipeline_mode=pl.Buffered(3) for this
        # streamed weight operand to fully hide the per-step weight DMA.
        pl.BlockSpec((tk, tn), lambda i, j, k: (k, j)),
        pl.BlockSpec((1, tn), lambda i, j, k: (0, j)),
    ]
    args = [x, w, b.reshape(1, N)]
    if residual is not None:
        in_specs.append(pl.BlockSpec((tm, tn), lambda i, j, k: (i, j)))
        args.append(residual)
        kern = functools.partial(_matmul_residual_kernel, activation=activation)
        io_alias = {3: 0}      # write the output in place of the residual
    else:
        kern = functools.partial(_matmul_kernel, activation=activation)
        io_alias = {}
    return pl.pallas_call(
        kern,
        out_shape=jax.ShapeDtypeStruct((M, N), out_dtype),
        grid=(M // tm, N // tn, K // tk),
        in_specs=in_specs,
        out_specs=pl.BlockSpec((tm, tn), lambda i, j, k: (i, j)),
        scratch_shapes=[pltpu.VMEM((tm, tn), jnp.float32)],
        input_output_aliases=io_alias,
        compiler_params=pltpu.CompilerParams(
            dimension_semantics=("parallel", "parallel", "arbitrary"),
            vmem_limit_bytes=cfg["vmem"]),
    )(*args)


def attention(qkv, *, num_heads, scale, n_valid, out_dtype):
    """qkv: [B, n_pad, 3E] fused slab -> attention output [B, n_pad, E].

    Padded key columns (>= n_valid) are masked out of the softmax.  When the
    head dim allows a 128-lane head group, the grid is (B, n_groups) with
    lane-aligned q/k/v DMAs; otherwise a whole-slab per-batch kernel is used.
    """
    B, n_pad, three_e = qkv.shape
    e = three_e // 3
    hd = e // num_heads
    cfg = _tuning()

    # Pick a head-group lane width that is a multiple of 128 if achievable.
    hg = num_heads
    if hd % 128 == 0:
        hg = 1
    elif (128 % hd == 0) and (num_heads % (128 // hd) == 0):
        hg = 128 // hd
    gw = hg * hd
    n_groups = num_heads // hg

    # TODO(synk): add a KV-tiled (flash-style) fallback for very long token
    # counts so the per-step slab stays well inside v7x's 64 MiB VMEM.
    if gw % 128 == 0:
        kern = functools.partial(_attn_group_kernel, heads_per_group=hg,
                                 scale=scale, n_valid=n_valid)
        return pl.pallas_call(
            kern,
            out_shape=jax.ShapeDtypeStruct((B, n_pad, e), out_dtype),
            grid=(B, n_groups),
            in_specs=[
                pl.BlockSpec((None, n_pad, gw), lambda b, g: (b, 0, g)),
                pl.BlockSpec((None, n_pad, gw),
                             lambda b, g: (b, 0, n_groups + g)),
                pl.BlockSpec((None, n_pad, gw),
                             lambda b, g: (b, 0, 2 * n_groups + g)),
            ],
            out_specs=pl.BlockSpec((None, n_pad, gw), lambda b, g: (b, 0, g)),
            compiler_params=pltpu.CompilerParams(
                dimension_semantics=("parallel", "parallel"),
                vmem_limit_bytes=cfg["vmem"]),
        )(qkv, qkv, qkv)

    kern = functools.partial(_attn_slab_kernel, num_heads=num_heads,
                             scale=scale, n_valid=n_valid)
    return pl.pallas_call(
        kern,
        out_shape=jax.ShapeDtypeStruct((B, n_pad, e), out_dtype),
        grid=(B,),
        in_specs=[pl.BlockSpec((None, n_pad, three_e), lambda b: (b, 0, 0))],
        out_specs=pl.BlockSpec((None, n_pad, e), lambda b: (b, 0, 0)),
        compiler_params=pltpu.CompilerParams(
            dimension_semantics=("parallel",),
            vmem_limit_bytes=cfg["vmem"]),
    )(qkv)


# ---------------------------------------------------------------------------
# Glue (reshapes / parameter setup in plain JAX)
# ---------------------------------------------------------------------------

def extract_patches(x, patch_size):
    """NCHW image -> [B, num_patches, C*p*p], patch vector ordered (c, ph, pw)
    to match the PyTorch Conv2d(kernel=stride=patch) contraction order."""
    B, C, H, W = x.shape
    p = patch_size
    gh, gw = H // p, W // p
    x = x.reshape(B, C, gh, p, gw, p)
    x = x.transpose(0, 2, 4, 1, 3, 5)          # [B, gh, gw, C, p, p]
    return x.reshape(B, gh * gw, C * p * p)


def init_vit_params(key, *, img_size, patch_size, in_c, embed_dim, depth,
                    num_heads, mlp_ratio, num_classes, dtype=jnp.bfloat16):
    """Deterministic synthetic init mirroring the PyTorch module's shapes.
    Weights are stored in the compute dtype (bf16) to halve HBM traffic."""
    gh = img_size // patch_size
    num_patches = gh * gh
    mlp_hidden = int(embed_dim * mlp_ratio)
    patch_dim = in_c * patch_size * patch_size

    keys = iter(jax.random.split(key, 8 + depth * 8))
    nrm = lambda k, shp, std: (jax.random.normal(k, shp, jnp.float32)
                               * std).astype(dtype)
    zeros = lambda shp: jnp.zeros(shp, dtype)
    ones = lambda shp: jnp.ones(shp, dtype)

    params = {
        # Conv2d weight [E, C, p, p] flattened to a [C*p*p, E] matmul weight.
        "patch_w": nrm(next(keys), (embed_dim, patch_dim), 0.02).T,
        "patch_b": zeros((embed_dim,)),
        "cls_token": nrm(next(keys), (1, 1, embed_dim), 0.02),
        "pos_embed": nrm(next(keys), (1, num_patches + 1, embed_dim), 0.02),
        "norm_g": ones((embed_dim,)),
        "norm_b": zeros((embed_dim,)),
        "head_w": nrm(next(keys), (embed_dim, num_classes), 0.01),
        "head_b": zeros((num_classes,)),
        "blocks": [],
    }
    for _ in range(depth):
        params["blocks"].append({
            "ln1_g": ones((embed_dim,)),
            "ln1_b": zeros((embed_dim,)),
            # columns ordered q|k|v, head-major within each third (PyTorch
            # reshape (B,N,3,H,hd) convention).
            "qkv_w": nrm(next(keys), (embed_dim, 3 * embed_dim), 0.01),
            "qkv_b": zeros((3 * embed_dim,)),
            "proj_w": nrm(next(keys), (embed_dim, embed_dim), 0.01),
            "proj_b": zeros((embed_dim,)),
            "ln2_g": ones((embed_dim,)),
            "ln2_b": zeros((embed_dim,)),
            "fc1_w": nrm(next(keys), (embed_dim, mlp_hidden), 0.01),
            "fc1_b": zeros((mlp_hidden,)),
            "fc2_w": nrm(next(keys), (mlp_hidden, embed_dim), 0.01),
            "fc2_b": zeros((embed_dim,)),
        })
    return params


def vit_forward(x, params, *, num_heads, patch_size,
                compute_dtype=jnp.bfloat16):
    B = x.shape[0]
    E = params["pos_embed"].shape[-1]

    # Patch embedding (Conv2d k=s=patch == unfold + matmul, done in kernel)
    x = x.astype(compute_dtype)
    patches = extract_patches(x, patch_size)               # [B, P, C*p*p]
    Pn = patches.shape[1]
    tokens = matmul(patches.reshape(B * Pn, -1),
                    params["patch_w"], params["patch_b"])
    tokens = tokens.reshape(B, Pn, E)

    # cls token + positional embedding (tiny; plain XLA)
    cls = jnp.broadcast_to(params["cls_token"], (B, 1, E)).astype(compute_dtype)
    xt = jnp.concatenate([cls, tokens], axis=1) \
        + params["pos_embed"].astype(compute_dtype)         # [B, N, E]
    N = Pn + 1

    # Pad the per-batch token count ONCE so every downstream row tile is
    # 8-aligned; padded keys are masked in attention, padded rows otherwise
    # stay confined (LN/matmuls are row-wise) and are never read at the end.
    n_pad = _round_up(N, 8)
    if n_pad > N:
        xt = jnp.pad(xt, ((0, 0), (0, n_pad - N), (0, 0)))
    M = B * n_pad
    hd = E // num_heads
    scale = hd ** -0.5
    xt = xt.reshape(M, E).astype(compute_dtype)              # [M, E] bf16

    # Transformer blocks: 4 fused kernel calls per block, no XLA transposes.
    for bp in params["blocks"]:
        # LN1 -> QKV projection (LN hoisted out of the N-tile loop)
        qkv = ln_matmul(xt, bp["ln1_g"], bp["ln1_b"],
                        bp["qkv_w"], bp["qkv_b"])            # [M, 3E]
        # Multi-head attention (padded keys masked, per-head direct stores)
        ao = attention(qkv.reshape(B, n_pad, 3 * E), num_heads=num_heads,
                       scale=scale, n_valid=N, out_dtype=compute_dtype)
        # TODO(synk): fuse (softmax@v)@proj_w into the attention kernel to keep
        # `ao` out of HBM entirely (largest relative win on v5e HBM BW).
        xt = matmul(ao.reshape(M, E), bp["proj_w"], bp["proj_b"],
                    residual=xt)
        # LN2 -> fc1 -> GELU (one kernel)
        h = ln_matmul(xt, bp["ln2_g"], bp["ln2_b"],
                      bp["fc1_w"], bp["fc1_b"], activation="gelu")
        # fc2 + residual add (aliased output)
        xt = matmul(h, bp["fc2_w"], bp["fc2_b"], residual=xt)

    # Final LayerNorm only matters for the rows we keep (the cls token), so it
    # is fused with the classification head (pre_logits = Identity).
    cls_rows = xt.reshape(B, n_pad, E)[:, 0]                 # [B, E]
    logits = ln_matmul(cls_rows, params["norm_g"], params["norm_b"],
                       params["head_w"], params["head_b"],
                       out_dtype=jnp.float32)
    return logits


# ---------------------------------------------------------------------------
# Main
# ---------------------------------------------------------------------------

if __name__ == "__main__":
    # Small, consistent ViT config: 16x16 image, 4x4 patches -> 16 patches,
    # +1 cls token = 17 tokens (padded to 24); embed_dim=32, 4 heads, depth=2,
    # 5 classes.
    IMG, PATCH, IN_C = 16, 4, 4
    EMBED, DEPTH, HEADS, MLP_RATIO, NUM_CLASSES = 32, 2, 4, 4.0, 5
    BATCH = 2

    key = jax.random.PRNGKey(0)
    k_params, k_x = jax.random.split(key)

    params = init_vit_params(
        k_params, img_size=IMG, patch_size=PATCH, in_c=IN_C, embed_dim=EMBED,
        depth=DEPTH, num_heads=HEADS, mlp_ratio=MLP_RATIO,
        num_classes=NUM_CLASSES, dtype=jnp.bfloat16)

    x = jax.random.normal(k_x, (BATCH, IN_C, IMG, IMG), jnp.float32)  # NCHW

    fwd = jax.jit(functools.partial(vit_forward, num_heads=HEADS,
                                    patch_size=PATCH))
    logits = fwd(x, params)
    jax.block_until_ready(logits)
    assert logits.shape == (BATCH, NUM_CLASSES)
    assert logits.dtype == jnp.float32
    print("KERNEL_OK")
</pallas_src>

<mosaic_0001>
module attributes {stable_mosaic.version = 11 : i64} {
  func.func @_matmul_kernel(%arg0: i32, %arg1: i32, %arg2: i32, %arg3: memref<32x64xbf16, #tpu.memory_space<vmem>>, %arg4: memref<64x32xbf16, #tpu.memory_space<vmem>>, %arg5: memref<1x32xbf16, #tpu.memory_space<vmem>>, %arg6: memref<32x32xbf16, #tpu.memory_space<vmem>>, %arg7: memref<32x32xf32, #tpu.memory_space<vmem>>) attributes {dimension_semantics = [#tpu.dimension_semantics<parallel>, #tpu.dimension_semantics<parallel>, #tpu.dimension_semantics<arbitrary>], iteration_bounds = array<i64: 1, 1, 1>, scalar_prefetch = 0 : i64, scratch_operands = 1 : i64, tpu.core_type = #tpu.core_type<tc>, window_params = [{transform_indices = @transform_0, window_bounds = array<i64: 32, 64>}, {transform_indices = @transform_1, window_bounds = array<i64: 64, 32>}, {transform_indices = @transform_2, window_bounds = array<i64: 1, 32>}, {transform_indices = @transform_3, window_bounds = array<i64: 32, 32>}]} {
    %c0_i32 = arith.constant 0 : i32
    %0 = arith.cmpi eq, %arg2, %c0_i32 : i32
    %1 = arith.extui %0 : i1 to i32
    %c0_i32_0 = arith.constant 0 : i32
    %2 = arith.cmpi ne, %1, %c0_i32_0 : i32
    scf.if %2 {
      %cst_10 = arith.constant 0.000000e+00 : f32
      %12 = vector.broadcast %cst_10 : f32 to vector<32x32xf32>
      %c0_11 = arith.constant 0 : index
      %c0_12 = arith.constant 0 : index
      %13 = vector.load %arg7[%c0_11, %c0_12] : memref<32x32xf32, #tpu.memory_space<vmem>>, vector<32x32xf32>
      tpu.vector_store %arg7[%c0_11, %c0_12], %12 {strides = array<i32>} : memref<32x32xf32, #tpu.memory_space<vmem>>, vector<32x32xf32>,
    } else {
    }
    %c0 = arith.constant 0 : index
    %c0_1 = arith.constant 0 : index
    %3 = vector.load %arg7[%c0, %c0_1] : memref<32x32xf32, #tpu.memory_space<vmem>>, vector<32x32xf32>
    %c0_2 = arith.constant 0 : index
    %c0_3 = arith.constant 0 : index
    %4 = vector.load %arg3[%c0_2, %c0_3] : memref<32x64xbf16, #tpu.memory_space<vmem>>, vector<32x64xbf16>
    %c0_4 = arith.constant 0 : index
    %c0_5 = arith.constant 0 : index
    %5 = vector.load %arg4[%c0_4, %c0_5] : memref<64x32xbf16, #tpu.memory_space<vmem>>, vector<64x32xbf16>
    %cst = arith.constant dense<0.000000e+00> : vector<32x32xf32>
    %6 = tpu.matmul %4, %5, %cst {dimension_numbers = #tpu.dot_dimension_numbers<[1], [0], [0], [1], [0, 0, 1, 1], [], []>} : vector<32x64xbf16>, vector<64x32xbf16>, vector<32x32xf32> -> vector<32x32xf32>
    %7 = arith.addf %3, %6 : vector<32x32xf32>
    %c0_6 = arith.constant 0 : index
    %c0_7 = arith.constant 0 : index
    %8 = vector.load %arg7[%c0_6, %c0_7] : memref<32x32xf32, #tpu.memory_space<vmem>>, vector<32x32xf32>
    tpu.vector_store %arg7[%c0_6, %c0_7], %7 {strides = array<i32>} : memref<32x32xf32, #tpu.memory_space<vmem>>, vector<32x32xf32>,
    %c0_i32_8 = arith.constant 0 : i32
    %9 = arith.cmpi eq, %arg2, %c0_i32_8 : i32
    %10 = arith.extui %9 : i1 to i32
    %c0_i32_9 = arith.constant 0 : i32
    %11 = arith.cmpi ne, %10, %c0_i32_9 : i32
    scf.if %11 {
      %c0_10 = arith.constant 0 : index
      %c0_11 = arith.constant 0 : index
      %12 = vector.load %arg7[%c0_10, %c0_11] : memref<32x32xf32, #tpu.memory_space<vmem>>, vector<32x32xf32>
      %c0_12 = arith.constant 0 : index
      %c0_13 = arith.constant 0 : index
      %13 = vector.load %arg5[%c0_12, %c0_13] : memref<1x32xbf16, #tpu.memory_space<vmem>>, vector<1x32xbf16>
      %14 = arith.extf %13 : vector<1x32xbf16> to vector<1x32xf32>
      %15 = vector.broadcast %14 : vector<1x32xf32> to vector<32x32xf32>
      %16 = arith.addf %12, %15 : vector<32x32xf32>
      %17 = arith.truncf %16 : vector<32x32xf32> to vector<32x32xbf16>
      %c0_14 = arith.constant 0 : index
      %c0_15 = arith.constant 0 : index
      %18 = vector.load %arg6[%c0_14, %c0_15] : memref<32x32xbf16, #tpu.memory_space<vmem>>, vector<32x32xbf16>
      tpu.vector_store %arg6[%c0_14, %c0_15], %17 {strides = array<i32>} : memref<32x32xbf16, #tpu.memory_space<vmem>>, vector<32x32xbf16>,
    } else {
    }
    return
  }
  func.func @transform_0(%arg0: i32, %arg1: i32, %arg2: i32) -> (i32, i32) {
    %c0_i32 = arith.constant 0 : i32
    return %arg0, %arg2 : i32, i32
  }
  func.func @transform_1(%arg0: i32, %arg1: i32, %arg2: i32) -> (i32, i32) {
    %c0_i32 = arith.constant 0 : i32
    return %arg2, %arg1 : i32, i32
  }
  func.func @transform_2(%arg0: i32, %arg1: i32, %arg2: i32) -> (i32, i32) {
    %c0_i32 = arith.constant 0 : i32
    %c0_i32_0 = arith.constant 0 : i32
    return %c0_i32, %arg1 : i32, i32
  }
  func.func @transform_3(%arg0: i32, %arg1: i32, %arg2: i32) -> (i32, i32) {
    %c0_i32 = arith.constant 0 : i32
    return %arg0, %arg1 : i32, i32
  }
}

module attributes {stable_mosaic.version = 11 : i64} {
  func.func @_attn_slab_kernel(%arg0: i32, %arg1: memref<1x24x96xbf16, #tpu.memory_space<vmem>>, %arg2: memref<1x24x32xbf16, #tpu.memory_space<vmem>>) attributes {dimension_semantics = [#tpu.dimension_semantics<parallel>], iteration_bounds = array<i64: 2>, scalar_prefetch = 0 : i64, scratch_operands = 0 : i64, tpu.core_type = #tpu.core_type<tc>, window_params = [{transform_indices = @transform_0, window_bounds = array<i64: 1, 24, 96>}, {transform_indices = @transform_1, window_bounds = array<i64: 1, 24, 32>}]} {
    %c0 = arith.constant 0 : index
    %c0_0 = arith.constant 0 : index
    %c0_1 = arith.constant 0 : index
    %0 = vector.load %arg1[%c0, %c0_0, %c0_1] : memref<1x24x96xbf16, #tpu.memory_space<vmem>>, vector<1x24x96xbf16>
    %1 = vector.shape_cast %0 : vector<1x24x96xbf16> to vector<24x96xbf16>
    %2 = tpu.iota {dimensions = array<i32: 1>} : vector<1x24xi32>
    %c17_i32 = arith.constant 17 : i32
    %3 = vector.broadcast %c17_i32 : i32 to vector<1x24xi32>
    %4 = arith.cmpi slt, %2, %3 : vector<1x24xi32>
    %5 = vector.extract_strided_slice %1 {offsets = [0, 0], sizes = [24, 8], strides = [1, 1]} : vector<24x96xbf16> to vector<24x8xbf16>
    %6 = vector.extract_strided_slice %1 {offsets = [0, 32], sizes = [24, 8], strides = [1, 1]} : vector<24x96xbf16> to vector<24x8xbf16>
    %7 = vector.extract_strided_slice %1 {offsets = [0, 64], sizes = [24, 8], strides = [1, 1]} : vector<24x96xbf16> to vector<24x8xbf16>
    %8 = tpu.transpose %6, [1, 0] : vector<24x8xbf16> -> vector<8x24xbf16>
    %cst = arith.constant dense<0.000000e+00> : vector<24x24xf32>
    %9 = tpu.matmul %5, %8, %cst {dimension_numbers = #tpu.dot_dimension_numbers<[1], [0], [0], [1], [0, 0, 1, 1], [], []>} : vector<24x8xbf16>, vector<8x24xbf16>, vector<24x24xf32> -> vector<24x24xf32>
    %cst_2 = arith.constant 0.353553385 : f32
    %10 = vector.broadcast %cst_2 : f32 to vector<24x24xf32>
    %11 = arith.mulf %9, %10 : vector<24x24xf32>
    %cst_3 = arith.constant -1.000000e+30 : f32
    %12 = vector.shape_cast %4 : vector<1x24xi1> to vector<1x24xi1>
    %13 = vector.broadcast %12 : vector<1x24xi1> to vector<24x24xi1>
    %14 = vector.broadcast %cst_3 : f32 to vector<24x24xf32>
    %15 = arith.select %13, %11, %14 : vector<24x24xi1>, vector<24x24xf32>
    %cst_4 = arith.constant dense<0xFF800000> : vector<24xf32>
    %16 = vector.multi_reduction <maximumf>, %15, %cst_4 [1] : vector<24x24xf32> to vector<24xf32>
    %17 = vector.shape_cast %16 : vector<24xf32> to vector<24x1xf32>
    %18 = vector.broadcast %17 : vector<24x1xf32> to vector<24x24xf32>
    %19 = arith.subf %15, %18 : vector<24x24xf32>
    %20 = math.exp %19 : vector<24x24xf32>
    %cst_5 = arith.constant dense<0.000000e+00> : vector<24xf32>
    %21 = vector.multi_reduction <add>, %20, %cst_5 [1] : vector<24x24xf32> to vector<24xf32>
    %22 = vector.shape_cast %21 : vector<24xf32> to vector<24x1xf32>
    %23 = tpu.reciprocal %22 {approx = true} : vector<24x1xf32> -> vector<24x1xf32>
    %24 = vector.broadcast %23 : vector<24x1xf32> to vector<24x24xf32>
    %25 = arith.mulf %20, %24 : vector<24x24xf32>
    %26 = arith.truncf %25 : vector<24x24xf32> to vector<24x24xbf16>
    %cst_6 = arith.constant dense<0.000000e+00> : vector<24x8xf32>
    %27 = tpu.matmul %26, %7, %cst_6 {dimension_numbers = #tpu.dot_dimension_numbers<[1], [0], [0], [1], [0, 0, 1, 1], [], []>} : vector<24x24xbf16>, vector<24x8xbf16>, vector<24x8xf32> -> vector<24x8xf32>
    %28 = arith.truncf %27 : vector<24x8xf32> to vector<24x8xbf16>
    %c0_7 = arith.constant 0 : index
    %c0_8 = arith.constant 0 : index
    %c0_9 = arith.constant 0 : index
    %29 = vector.load %arg2[%c0_7, %c0_8, %c0_9] : memref<1x24x32xbf16, #tpu.memory_space<vmem>>, vector<1x24x8xbf16>
    %30 = vector.shape_cast %29 : vector<1x24x8xbf16> to vector<24x8xbf16>
    %31 = vector.shape_cast %28 : vector<24x8xbf16> to vector<1x24x8xbf16>
    tpu.vector_store %arg2[%c0_7, %c0_8, %c0_9], %31 {strides = array<i32>} : memref<1x24x32xbf16, #tpu.memory_space<vmem>>, vector<1x24x8xbf16>,
    %32 = vector.extract_strided_slice %1 {offsets = [0, 8], sizes = [24, 8], strides = [1, 1]} : vector<24x96xbf16> to vector<24x8xbf16>
    %33 = vector.extract_strided_slice %1 {offsets = [0, 40], sizes = [24, 8], strides = [1, 1]} : vector<24x96xbf16> to vector<24x8xbf16>
    %34 = vector.extract_strided_slice %1 {offsets = [0, 72], sizes = [24, 8], strides = [1, 1]} : vector<24x96xbf16> to vector<24x8xbf16>
    %35 = tpu.transpose %33, [1, 0] : vector<24x8xbf16> -> vector<8x24xbf16>
    %cst_10 = arith.constant dense<0.000000e+00> : vector<24x24xf32>
    %36 = tpu.matmul %32, %35, %cst_10 {dimension_numbers = #tpu.dot_dimension_numbers<[1], [0], [0], [1], [0, 0, 1, 1], [], []>} : vector<24x8xbf16>, vector<8x24xbf16>, vector<24x24xf32> -> vector<24x24xf32>
    %cst_11 = arith.constant 0.353553385 : f32
    %37 = vector.broadcast %cst_11 : f32 to vector<24x24xf32>
    %38 = arith.mulf %36, %37 : vector<24x24xf32>
    %cst_12 = arith.constant -1.000000e+30 : f32
    %39 = vector.shape_cast %4 : vector<1x24xi1> to vector<1x24xi1>
    %40 = vector.broadcast %39 : vector<1x24xi1> to vector<24x24xi1>
    %41 = vector.broadcast %cst_12 : f32 to vector<24x24xf32>
    %42 = arith.select %40, %38, %41 : vector<24x24xi1>, vector<24x24xf32>
    %cst_13 = arith.constant dense<0xFF800000> : vector<24xf32>
    %43 = vector.multi_reduction <maximumf>, %42, %cst_13 [1] : vector<24x24xf32> to vector<24xf32>
    %44 = vector.shape_cast %43 : vector<24xf32> to vector<24x1xf32>
    %45 = vector.broadcast %44 : vector<24x1xf32> to vector<24x24xf32>
    %46 = arith.subf %42, %45 : vector<24x24xf32>
    %47 = math.exp %46 : vector<24x24xf32>
    %cst_14 = arith.constant dense<0.000000e+00> : vector<24xf32>
    %48 = vector.multi_reduction <add>, %47, %cst_14 [1] : vector<24x24xf32> to vector<24xf32>
    %49 = vector.shape_cast %48 : vector<24xf32> to vector<24x1xf32>
    %50 = tpu.reciprocal %49 {approx = true} : vector<24x1xf32> -> vector<24x1xf32>
    %51 = vector.broadcast %50 : vector<24x1xf32> to vector<24x24xf32>
    %52 = arith.mulf %47, %51 : vector<24x24xf32>
    %53 = arith.truncf %52 : vector<24x24xf32> to vector<24x24xbf16>
    %cst_15 = arith.constant dense<0.000000e+00> : vector<24x8xf32>
    %54 = tpu.matmul %53, %34, %cst_15 {dimension_numbers = #tpu.dot_dimension_numbers<[1], [0], [0], [1], [0, 0, 1, 1], [], []>} : vector<24x24xbf16>, vector<24x8xbf16>, vector<24x8xf32> -> vector<24x8xf32>
    %55 = arith.truncf %54 : vector<24x8xf32> to vector<24x8xbf16>
    %c0_16 = arith.constant 0 : index
    %c0_17 = arith.constant 0 : index
    %c8 = arith.constant 8 : index
    %56 = vector.load %arg2[%c0_16, %c0_17, %c8] : memref<1x24x32xbf16, #tpu.memory_space<vmem>>, vector<1x24x8xbf16>
    %57 = vector.shape_cast %56 : vector<1x24x8xbf16> to vector<24x8xbf16>
    %58 = vector.shape_cast %55 : vector<24x8xbf16> to vector<1x24x8xbf16>
    tpu.vector_store %arg2[%c0_16, %c0_17, %c8], %58 {strides = array<i32>} : memref<1x24x32xbf16, #tpu.memory_space<vmem>>, vector<1x24x8xbf16>,
    %59 = vector.extract_strided_slice %1 {offsets = [0, 16], sizes = [24, 8], strides = [1, 1]} : vector<24x96xbf16> to vector<24x8xbf16>
    %60 = vector.extract_strided_slice %1 {offsets = [0, 48], sizes = [24, 8], strides = [1, 1]} : vector<24x96xbf16> to vector<24x8xbf16>
    %61 = vector.extract_strided_slice %1 {offsets = [0, 80], sizes = [24, 8], strides = [1, 1]} : vector<24x96xbf16> to vector<24x8xbf16>
    %62 = tpu.transpose %60, [1, 0] : vector<24x8xbf16> -> vector<8x24xbf16>
    %cst_18 = arith.constant dense<0.000000e+00> : vector<24x24xf32>
    %63 = tpu.matmul %59, %62, %cst_18 {dimension_numbers = #tpu.dot_dimension_numbers<[1], [0], [0], [1], [0, 0, 1, 1], [], []>} : vector<24x8xbf16>, vector<8x24xbf16>, vector<24x24xf32> -> vector<24x24xf32>
    %cst_19 = arith.constant 0.353553385 : f32
    %64 = vector.broadcast %cst_19 : f32 to vector<24x24xf32>
    %65 = arith.mulf %63, %64 : vector<24x24xf32>
    %cst_20 = arith.constant -1.000000e+30 : f32
    %66 = vector.shape_cast %4 : vector<1x24xi1> to vector<1x24xi1>
    %67 = vector.broadcast %66 : vector<1x24xi1> to vector<24x24xi1>
    %68 = vector.broadcast %cst_20 : f32 to vector<24x24xf32>
    %69 = arith.select %67, %65, %68 : vector<24x24xi1>, vector<24x24xf32>
    %cst_21 = arith.constant dense<0xFF800000> : vector<24xf32>
    %70 = vector.multi_reduction <maximumf>, %69, %cst_21 [1] : vector<24x24xf32> to vector<24xf32>
    %71 = vector.shape_cast %70 : vector<24xf32> to vector<24x1xf32>
    %72 = vector.broadcast %71 : vector<24x1xf32> to vector<24x24xf32>
    %73 = arith.subf %69, %72 : vector<24x24xf32>
    %74 = math.exp %73 : vector<24x24xf32>
    %cst_22 = arith.constant dense<0.000000e+00> : vector<24xf32>
    %75 = vector.multi_reduction <add>, %74, %cst_22 [1] : vector<24x24xf32> to vector<24xf32>
    %76 = vector.shape_cast %75 : vector<24xf32> to vector<24x1xf32>
    %77 = tpu.reciprocal %76 {approx = true} : vector<24x1xf32> -> vector<24x1xf32>
    %78 = vector.broadcast %77 : vector<24x1xf32> to vector<24x24xf32>
    %79 = arith.mulf %74, %78 : vector<24x24xf32>
    %80 = arith.truncf %79 : vector<24x24xf32> to vector<24x24xbf16>
    %cst_23 = arith.constant dense<0.000000e+00> : vector<24x8xf32>
    %81 = tpu.matmul %80, %61, %cst_23 {dimension_numbers = #tpu.dot_dimension_numbers<[1], [0], [0], [1], [0, 0, 1, 1], [], []>} : vector<24x24xbf16>, vector<24x8xbf16>, vector<24x8xf32> -> vector<24x8xf32>
    %82 = arith.truncf %81 : vector<24x8xf32> to vector<24x8xbf16>
    %c0_24 = arith.constant 0 : index
    %c0_25 = arith.constant 0 : index
    %c16 = arith.constant 16 : index
    %83 = vector.load %arg2[%c0_24, %c0_25, %c16] : memref<1x24x32xbf16, #tpu.memory_space<vmem>>, vector<1x24x8xbf16>
    %84 = vector.shape_cast %83 : vector<1x24x8xbf16> to vector<24x8xbf16>
    %85 = vector.shape_cast %82 : vector<24x8xbf16> to vector<1x24x8xbf16>
    tpu.vector_store %arg2[%c0_24, %c0_25, %c16], %85 {strides = array<i32>} : memref<1x24x32xbf16, #tpu.memory_space<vmem>>, vector<1x24x8xbf16>,
    %86 = vector.extract_strided_slice %1 {offsets = [0, 24], sizes = [24, 8], strides = [1, 1]} : vector<24x96xbf16> to vector<24x8xbf16>
    %87 = vector.extract_strided_slice %1 {offsets = [0, 56], sizes = [24, 8], strides = [1, 1]} : vector<24x96xbf16> to vector<24x8xbf16>
    %88 = vector.extract_strided_slice %1 {offsets = [0, 88], sizes = [24, 8], strides = [1, 1]} : vector<24x96xbf16> to vector<24x8xbf16>
    %89 = tpu.transpose %87, [1, 0] : vector<24x8xbf16> -> vector<8x24xbf16>
    %cst_26 = arith.constant dense<0.000000e+00> : vector<24x24xf32>
    %90 = tpu.matmul %86, %89, %cst_26 {dimension_numbers = #tpu.dot_dimension_numbers<[1], [0], [0], [1], [0, 0, 1, 1], [], []>} : vector<24x8xbf16>, vector<8x24xbf16>, vector<24x24xf32> -> vector<24x24xf32>
    %cst_27 = arith.constant 0.353553385 : f32
    %91 = vector.broadcast %cst_27 : f32 to vector<24x24xf32>
    %92 = arith.mulf %90, %91 : vector<24x24xf32>
    %cst_28 = arith.constant -1.000000e+30 : f32
    %93 = vector.shape_cast %4 : vector<1x24xi1> to vector<1x24xi1>
    %94 = vector.broadcast %93 : vector<1x24xi1> to vector<24x24xi1>
    %95 = vector.broadcast %cst_28 : f32 to vector<24x24xf32>
    %96 = arith.select %94, %92, %95 : vector<24x24xi1>, vector<24x24xf32>
    %cst_29 = arith.constant dense<0xFF800000> : vector<24xf32>
    %97 = vector.multi_reduction <maximumf>, %96, %cst_29 [1] : vector<24x24xf32> to vector<24xf32>
    %98 = vector.shape_cast %97 : vector<24xf32> to vector<24x1xf32>
    %99 = vector.broadcast %98 : vector<24x1xf32> to vector<24x24xf32>
    %100 = arith.subf %96, %99 : vector<24x24xf32>
    %101 = math.exp %100 : vector<24x24xf32>
    %cst_30 = arith.constant dense<0.000000e+00> : vector<24xf32>
    %102 = vector.multi_reduction <add>, %101, %cst_30 [1] : vector<24x24xf32> to vector<24xf32>
    %103 = vector.shape_cast %102 : vector<24xf32> to vector<24x1xf32>
    %104 = tpu.reciprocal %103 {approx = true} : vector<24x1xf32> -> vector<24x1xf32>
    %105 = vector.broadcast %104 : vector<24x1xf32> to vector<24x24xf32>
    %106 = arith.mulf %101, %105 : vector<24x24xf32>
    %107 = arith.truncf %106 : vector<24x24xf32> to vector<24x24xbf16>
    %cst_31 = arith.constant dense<0.000000e+00> : vector<24x8xf32>
    %108 = tpu.matmul %107, %88, %cst_31 {dimension_numbers = #tpu.dot_dimension_numbers<[1], [0], [0], [1], [0, 0, 1, 1], [], []>} : vector<24x24xbf16>, vector<24x8xbf16>, vector<24x8xf32> -> vector<24x8xf32>
    %109 = arith.truncf %108 : vector<24x8xf32> to vector<24x8xbf16>
    %c0_32 = arith.constant 0 : index
    %c0_33 = arith.constant 0 : index
    %c24 = arith.constant 24 : index
    %110 = vector.load %arg2[%c0_32, %c0_33, %c24] : memref<1x24x32xbf16, #tpu.memory_space<vmem>>, vector<1x24x8xbf16>
    %111 = vector.shape_cast %110 : vector<1x24x8xbf16> to vector<24x8xbf16>
    %112 = vector.shape_cast %109 : vector<24x8xbf16> to vector<1x24x8xbf16>
    tpu.vector_store %arg2[%c0_32, %c0_33, %c24], %112 {strides = array<i32>} : memref<1x24x32xbf16, #tpu.memory_space<vmem>>, vector<1x24x8xbf16>,
    return
  }
  func.func @transform_0(%arg0: i32) -> (i32, i32, i32) {
    %c0_i32 = arith.constant 0 : i32
    %c0_i32_0 = arith.constant 0 : i32
    %c0_i32_1 = arith.constant 0 : i32
    return %arg0, %c0_i32, %c0_i32_0 : i32, i32, i32
  }
  func.func @transform_1(%arg0: i32) -> (i32, i32, i32) {
    %c0_i32 = arith.constant 0 : i32
    %c0_i32_0 = arith.constant 0 : i32
    %c0_i32_1 = arith.constant 0 : i32
    return %arg0, %c0_i32, %c0_i32_0 : i32, i32, i32
  }
}

module attributes {stable_mosaic.version = 11 : i64} {
  func.func @_ln_matmul_kernel(%arg0: i32, %arg1: i32, %arg2: memref<48x32xbf16, #tpu.memory_space<vmem>>, %arg3: memref<1x32xbf16, #tpu.memory_space<vmem>>, %arg4: memref<1x32xbf16, #tpu.memory_space<vmem>>, %arg5: memref<32x96xbf16, #tpu.memory_space<vmem>>, %arg6: memref<1x96xbf16, #tpu.memory_space<vmem>>, %arg7: memref<48x96xbf16, #tpu.memory_space<vmem>>, %arg8: memref<48x32xbf16, #tpu.memory_space<vmem>>) attributes {dimension_semantics = [#tpu.dimension_semantics<parallel>, #tpu.dimension_semantics<arbitrary>], iteration_bounds = array<i64: 1, 1>, scalar_prefetch = 0 : i64, scratch_operands = 1 : i64, tpu.core_type = #tpu.core_type<tc>, window_params = [{transform_indices = @transform_0, window_bounds = array<i64: 48, 32>}, {pipeline_mode = #tpu.pipeline_mode<synchronous>, transform_indices = @transform_1, window_bounds = array<i64: 1, 32>}, {pipeline_mode = #tpu.pipeline_mode<synchronous>, transform_indices = @transform_2, window_bounds = array<i64: 1, 32>}, {transform_indices = @transform_3, window_bounds = array<i64: 32, 96>}, {transform_indices = @transform_4, window_bounds = array<i64: 1, 96>}, {transform_indices = @transform_5, window_bounds = array<i64: 48, 96>}]} {
    %c0_i32 = arith.constant 0 : i32
    %0 = arith.cmpi eq, %arg1, %c0_i32 : i32
    %1 = arith.extui %0 : i1 to i32
    %c0_i32_0 = arith.constant 0 : i32
    %2 = arith.cmpi ne, %1, %c0_i32_0 : i32
    scf.if %2 {
      %c0_8 = arith.constant 0 : index
      %c0_9 = arith.constant 0 : index
      %12 = vector.load %arg2[%c0_8, %c0_9] : memref<48x32xbf16, #tpu.memory_space<vmem>>, vector<48x32xbf16>
      %13 = arith.extf %12 : vector<48x32xbf16> to vector<48x32xf32>
      %cst_10 = arith.constant dense<0.000000e+00> : vector<48xf32>
      %14 = vector.multi_reduction <add>, %13, %cst_10 [1] : vector<48x32xf32> to vector<48xf32>
      %15 = vector.shape_cast %14 : vector<48xf32> to vector<48x1xf32>
      %cst_11 = arith.constant 3.200000e+01 : f32
      %16 = vector.broadcast %cst_11 : f32 to vector<48x1xf32>
      %17 = arith.divf %15, %16 : vector<48x1xf32>
      %18 = vector.broadcast %17 : vector<48x1xf32> to vector<48x32xf32>
      %19 = arith.subf %13, %18 : vector<48x32xf32>
      %20 = arith.mulf %19, %19 : vector<48x32xf32>
      %cst_12 = arith.constant dense<0.000000e+00> : vector<48xf32>
      %21 = vector.multi_reduction <add>, %20, %cst_12 [1] : vector<48x32xf32> to vector<48xf32>
      %22 = vector.shape_cast %21 : vector<48xf32> to vector<48x1xf32>
      %cst_13 = arith.constant 3.200000e+01 : f32
      %23 = vector.broadcast %cst_13 : f32 to vector<48x1xf32>
      %24 = arith.divf %22, %23 : vector<48x1xf32>
      %25 = vector.broadcast %17 : vector<48x1xf32> to vector<48x32xf32>
      %26 = arith.subf %13, %25 : vector<48x32xf32>
      %cst_14 = arith.constant 9.99999997E-7 : f32
      %27 = vector.broadcast %cst_14 : f32 to vector<48x1xf32>
      %28 = arith.addf %24, %27 : vector<48x1xf32>
      %29 = math.rsqrt %28 : vector<48x1xf32>
      %30 = vector.broadcast %29 : vector<48x1xf32> to vector<48x32xf32>
      %31 = arith.mulf %26, %30 : vector<48x32xf32>
      %c0_15 = arith.constant 0 : index
      %c0_16 = arith.constant 0 : index
      %32 = vector.load %arg3[%c0_15, %c0_16] : memref<1x32xbf16, #tpu.memory_space<vmem>>, vector<1x32xbf16>
      %33 = arith.extf %32 : vector<1x32xbf16> to vector<1x32xf32>
      %34 = vector.broadcast %33 : vector<1x32xf32> to vector<48x32xf32>
      %35 = arith.mulf %31, %34 : vector<48x32xf32>
      %c0_17 = arith.constant 0 : index
      %c0_18 = arith.constant 0 : index
      %36 = vector.load %arg4[%c0_17, %c0_18] : memref<1x32xbf16, #tpu.memory_space<vmem>>, vector<1x32xbf16>
      %37 = arith.extf %36 : vector<1x32xbf16> to vector<1x32xf32>
      %38 = vector.broadcast %37 : vector<1x32xf32> to vector<48x32xf32>
      %39 = arith.addf %35, %38 : vector<48x32xf32>
      %40 = arith.truncf %39 : vector<48x32xf32> to vector<48x32xbf16>
      %c0_19 = arith.constant 0 : index
      %c0_20 = arith.constant 0 : index
      %41 = vector.load %arg8[%c0_19, %c0_20] : memref<48x32xbf16, #tpu.memory_space<vmem>>, vector<48x32xbf16>
      tpu.vector_store %arg8[%c0_19, %c0_20], %40 {strides = array<i32>} : memref<48x32xbf16, #tpu.memory_space<vmem>>, vector<48x32xbf16>,
    } else {
    }
    %c0 = arith.constant 0 : index
    %c0_1 = arith.constant 0 : index
    %3 = vector.load %arg8[%c0, %c0_1] : memref<48x32xbf16, #tpu.memory_space<vmem>>, vector<48x32xbf16>
    %c0_2 = arith.constant 0 : index
    %c0_3 = arith.constant 0 : index
    %4 = vector.load %arg5[%c0_2, %c0_3] : memref<32x96xbf16, #tpu.memory_space<vmem>>, vector<32x96xbf16>
    %cst = arith.constant dense<0.000000e+00> : vector<48x96xf32>
    %5 = tpu.matmul %3, %4, %cst {dimension_numbers = #tpu.dot_dimension_numbers<[1], [0], [0], [1], [0, 0, 1, 1], [], []>} : vector<48x32xbf16>, vector<32x96xbf16>, vector<48x96xf32> -> vector<48x96xf32>
    %c0_4 = arith.constant 0 : index
    %c0_5 = arith.constant 0 : index
    %6 = vector.load %arg6[%c0_4, %c0_5] : memref<1x96xbf16, #tpu.memory_space<vmem>>, vector<1x96xbf16>
    %7 = arith.extf %6 : vector<1x96xbf16> to vector<1x96xf32>
    %8 = vector.broadcast %7 : vector<1x96xf32> to vector<48x96xf32>
    %9 = arith.addf %5, %8 : vector<48x96xf32>
    %10 = arith.truncf %9 : vector<48x96xf32> to vector<48x96xbf16>
    %c0_6 = arith.constant 0 : index
    %c0_7 = arith.constant 0 : index
    %11 = vector.load %arg7[%c0_6, %c0_7] : memref<48x96xbf16, #tpu.memory_space<vmem>>, vector<48x96xbf16>
    tpu.vector_store %arg7[%c0_6, %c0_7], %10 {strides = array<i32>} : memref<48x96xbf16, #tpu.memory_space<vmem>>, vector<48x96xbf16>,
    return
  }
  func.func @transform_0(%arg0: i32, %arg1: i32) -> (i32, i32) {
    %c0_i32 = arith.constant 0 : i32
    %c0_i32_0 = arith.constant 0 : i32
    return %arg0, %c0_i32 : i32, i32
  }
  func.func @transform_1(%arg0: i32, %arg1: i32) -> (i32, i32) {
    %c0_i32 = arith.constant 0 : i32
    %c0_i32_0 = arith.constant 0 : i32
    %c0_i32_1 = arith.constant 0 : i32
    return %c0_i32, %c0_i32_0 : i32, i32
  }
  func.func @transform_2(%arg0: i32, %arg1: i32) -> (i32, i32) {
    %c0_i32 = arith.constant 0 : i32
    %c0_i32_0 = arith.constant 0 : i32
    %c0_i32_1 = arith.constant 0 : i32
    return %c0_i32, %c0_i32_0 : i32, i32
  }
  func.func @transform_3(%arg0: i32, %arg1: i32) -> (i32, i32) {
    %c0_i32 = arith.constant 0 : i32
    %c0_i32_0 = arith.constant 0 : i32
    return %c0_i32, %arg1 : i32, i32
  }
  func.func @transform_4(%arg0: i32, %arg1: i32) -> (i32, i32) {
    %c0_i32 = arith.constant 0 : i32
    %c0_i32_0 = arith.constant 0 : i32
    return %c0_i32, %arg1 : i32, i32
  }
  func.func @transform_5(%arg0: i32, %arg1: i32) -> (i32, i32) {
    %c0_i32 = arith.constant 0 : i32
    return %arg0, %arg1 : i32, i32
  }
}

module attributes {stable_mosaic.version = 11 : i64} {
  func.func @_matmul_residual_kernel(%arg0: i32, %arg1: i32, %arg2: i32, %arg3: memref<48x32xbf16, #tpu.memory_space<vmem>>, %arg4: memref<32x32xbf16, #tpu.memory_space<vmem>>, %arg5: memref<1x32xbf16, #tpu.memory_space<vmem>>, %arg6: memref<48x32xbf16, #tpu.memory_space<vmem>>, %arg7: memref<48x32xbf16, #tpu.memory_space<vmem>>, %arg8: memref<48x32xf32, #tpu.memory_space<vmem>>) attributes {dimension_semantics = [#tpu.dimension_semantics<parallel>, #tpu.dimension_semantics<parallel>, #tpu.dimension_semantics<arbitrary>], iteration_bounds = array<i64: 1, 1, 1>, scalar_prefetch = 0 : i64, scratch_operands = 1 : i64, tpu.core_type = #tpu.core_type<tc>, window_params = [{transform_indices = @transform_0, window_bounds = array<i64: 48, 32>}, {transform_indices = @transform_1, window_bounds = array<i64: 32, 32>}, {transform_indices = @transform_2, window_bounds = array<i64: 1, 32>}, {transform_indices = @transform_3, window_bounds = array<i64: 48, 32>}, {transform_indices = @transform_4, window_bounds = array<i64: 48, 32>}]} {
    %c0_i32 = arith.constant 0 : i32
    %0 = arith.cmpi eq, %arg2, %c0_i32 : i32
    %1 = arith.extui %0 : i1 to i32
    %c0_i32_0 = arith.constant 0 : i32
    %2 = arith.cmpi ne, %1, %c0_i32_0 : i32
    scf.if %2 {
      %cst_10 = arith.constant 0.000000e+00 : f32
      %12 = vector.broadcast %cst_10 : f32 to vector<48x32xf32>
      %c0_11 = arith.constant 0 : index
      %c0_12 = arith.constant 0 : index
      %13 = vector.load %arg8[%c0_11, %c0_12] : memref<48x32xf32, #tpu.memory_space<vmem>>, vector<48x32xf32>
      tpu.vector_store %arg8[%c0_11, %c0_12], %12 {strides = array<i32>} : memref<48x32xf32, #tpu.memory_space<vmem>>, vector<48x32xf32>,
    } else {
    }
    %c0 = arith.constant 0 : index
    %c0_1 = arith.constant 0 : index
    %3 = vector.load %arg8[%c0, %c0_1] : memref<48x32xf32, #tpu.memory_space<vmem>>, vector<48x32xf32>
    %c0_2 = arith.constant 0 : index
    %c0_3 = arith.constant 0 : index
    %4 = vector.load %arg3[%c0_2, %c0_3] : memref<48x32xbf16, #tpu.memory_space<vmem>>, vector<48x32xbf16>
    %c0_4 = arith.constant 0 : index
    %c0_5 = arith.constant 0 : index
    %5 = vector.load %arg4[%c0_4, %c0_5] : memref<32x32xbf16, #tpu.memory_space<vmem>>, vector<32x32xbf16>
    %cst = arith.constant dense<0.000000e+00> : vector<48x32xf32>
    %6 = tpu.matmul %4, %5, %cst {dimension_numbers = #tpu.dot_dimension_numbers<[1], [0], [0], [1], [0, 0, 1, 1], [], []>} : vector<48x32xbf16>, vector<32x32xbf16>, vector<48x32xf32> -> vector<48x32xf32>
    %7 = arith.addf %3, %6 : vector<48x32xf32>
    %c0_6 = arith.constant 0 : index
    %c0_7 = arith.constant 0 : index
    %8 = vector.load %arg8[%c0_6, %c0_7] : memref<48x32xf32, #tpu.memory_space<vmem>>, vector<48x32xf32>
    tpu.vector_store %arg8[%c0_6, %c0_7], %7 {strides = array<i32>} : memref<48x32xf32, #tpu.memory_space<vmem>>, vector<48x32xf32>,
    %c0_i32_8 = arith.constant 0 : i32
    %9 = arith.cmpi eq, %arg2, %c0_i32_8 : i32
    %10 = arith.extui %9 : i1 to i32
    %c0_i32_9 = arith.constant 0 : i32
    %11 = arith.cmpi ne, %10, %c0_i32_9 : i32
    scf.if %11 {
      %c0_10 = arith.constant 0 : index
      %c0_11 = arith.constant 0 : index
      %12 = vector.load %arg8[%c0_10, %c0_11] : memref<48x32xf32, #tpu.memory_space<vmem>>, vector<48x32xf32>
      %c0_12 = arith.constant 0 : index
      %c0_13 = arith.constant 0 : index
      %13 = vector.load %arg5[%c0_12, %c0_13] : memref<1x32xbf16, #tpu.memory_space<vmem>>, vector<1x32xbf16>
      %14 = arith.extf %13 : vector<1x32xbf16> to vector<1x32xf32>
      %15 = vector.broadcast %14 : vector<1x32xf32> to vector<48x32xf32>
      %16 = arith.addf %12, %15 : vector<48x32xf32>
      %c0_14 = arith.constant 0 : index
      %c0_15 = arith.constant 0 : index
      %17 = vector.load %arg6[%c0_14, %c0_15] : memref<48x32xbf16, #tpu.memory_space<vmem>>, vector<48x32xbf16>
      %18 = arith.extf %17 : vector<48x32xbf16> to vector<48x32xf32>
      %19 = arith.addf %16, %18 : vector<48x32xf32>
      %20 = arith.truncf %19 : vector<48x32xf32> to vector<48x32xbf16>
      %c0_16 = arith.constant 0 : index
      %c0_17 = arith.constant 0 : index
      %21 = vector.load %arg7[%c0_16, %c0_17] : memref<48x32xbf16, #tpu.memory_space<vmem>>, vector<48x32xbf16>
      tpu.vector_store %arg7[%c0_16, %c0_17], %20 {strides = array<i32>} : memref<48x32xbf16, #tpu.memory_space<vmem>>, vector<48x32xbf16>,
    } else {
    }
    return
  }
  func.func @transform_0(%arg0: i32, %arg1: i32, %arg2: i32) -> (i32, i32) {
    %c0_i32 = arith.constant 0 : i32
    return %arg0, %arg2 : i32, i32
  }
  func.func @transform_1(%arg0: i32, %arg1: i32, %arg2: i32) -> (i32, i32) {
    %c0_i32 = arith.constant 0 : i32
    return %arg2, %arg1 : i32, i32
  }
  func.func @transform_2(%arg0: i32, %arg1: i32, %arg2: i32) -> (i32, i32) {
    %c0_i32 = arith.constant 0 : i32
    %c0_i32_0 = arith.constant 0 : i32
    return %c0_i32, %arg1 : i32, i32
  }
  func.func @transform_3(%arg0: i32, %arg1: i32, %arg2: i32) -> (i32, i32) {
    %c0_i32 = arith.constant 0 : i32
    return %arg0, %arg1 : i32, i32
  }
  func.func @transform_4(%arg0: i32, %arg1: i32, %arg2: i32) -> (i32, i32) {
    %c0_i32 = arith.constant 0 : i32
    return %arg0, %arg1 : i32, i32
  }
}

module attributes {stable_mosaic.version = 11 : i64} {
  func.func @_ln_matmul_kernel(%arg0: i32, %arg1: i32, %arg2: memref<48x32xbf16, #tpu.memory_space<vmem>>, %arg3: memref<1x32xbf16, #tpu.memory_space<vmem>>, %arg4: memref<1x32xbf16, #tpu.memory_space<vmem>>, %arg5: memref<32x128xbf16, #tpu.memory_space<vmem>>, %arg6: memref<1x128xbf16, #tpu.memory_space<vmem>>, %arg7: memref<48x128xbf16, #tpu.memory_space<vmem>>, %arg8: memref<48x32xbf16, #tpu.memory_space<vmem>>) attributes {dimension_semantics = [#tpu.dimension_semantics<parallel>, #tpu.dimension_semantics<arbitrary>], iteration_bounds = array<i64: 1, 1>, scalar_prefetch = 0 : i64, scratch_operands = 1 : i64, tpu.core_type = #tpu.core_type<tc>, window_params = [{transform_indices = @transform_0, window_bounds = array<i64: 48, 32>}, {pipeline_mode = #tpu.pipeline_mode<synchronous>, transform_indices = @transform_1, window_bounds = array<i64: 1, 32>}, {pipeline_mode = #tpu.pipeline_mode<synchronous>, transform_indices = @transform_2, window_bounds = array<i64: 1, 32>}, {transform_indices = @transform_3, window_bounds = array<i64: 32, 128>}, {transform_indices = @transform_4, window_bounds = array<i64: 1, 128>}, {transform_indices = @transform_5, window_bounds = array<i64: 48, 128>}]} {
    %c0_i32 = arith.constant 0 : i32
    %0 = arith.cmpi eq, %arg1, %c0_i32 : i32
    %1 = arith.extui %0 : i1 to i32
    %c0_i32_0 = arith.constant 0 : i32
    %2 = arith.cmpi ne, %1, %c0_i32_0 : i32
    scf.if %2 {
      %c0_11 = arith.constant 0 : index
      %c0_12 = arith.constant 0 : index
      %20 = vector.load %arg2[%c0_11, %c0_12] : memref<48x32xbf16, #tpu.memory_space<vmem>>, vector<48x32xbf16>
      %21 = arith.extf %20 : vector<48x32xbf16> to vector<48x32xf32>
      %cst_13 = arith.constant dense<0.000000e+00> : vector<48xf32>
      %22 = vector.multi_reduction <add>, %21, %cst_13 [1] : vector<48x32xf32> to vector<48xf32>
      %23 = vector.shape_cast %22 : vector<48xf32> to vector<48x1xf32>
      %cst_14 = arith.constant 3.200000e+01 : f32
      %24 = vector.broadcast %cst_14 : f32 to vector<48x1xf32>
      %25 = arith.divf %23, %24 : vector<48x1xf32>
      %26 = vector.broadcast %25 : vector<48x1xf32> to vector<48x32xf32>
      %27 = arith.subf %21, %26 : vector<48x32xf32>
      %28 = arith.mulf %27, %27 : vector<48x32xf32>
      %cst_15 = arith.constant dense<0.000000e+00> : vector<48xf32>
      %29 = vector.multi_reduction <add>, %28, %cst_15 [1] : vector<48x32xf32> to vector<48xf32>
      %30 = vector.shape_cast %29 : vector<48xf32> to vector<48x1xf32>
      %cst_16 = arith.constant 3.200000e+01 : f32
      %31 = vector.broadcast %cst_16 : f32 to vector<48x1xf32>
      %32 = arith.divf %30, %31 : vector<48x1xf32>
      %33 = vector.broadcast %25 : vector<48x1xf32> to vector<48x32xf32>
      %34 = arith.subf %21, %33 : vector<48x32xf32>
      %cst_17 = arith.constant 9.99999997E-7 : f32
      %35 = vector.broadcast %cst_17 : f32 to vector<48x1xf32>
      %36 = arith.addf %32, %35 : vector<48x1xf32>
      %37 = math.rsqrt %36 : vector<48x1xf32>
      %38 = vector.broadcast %37 : vector<48x1xf32> to vector<48x32xf32>
      %39 = arith.mulf %34, %38 : vector<48x32xf32>
      %c0_18 = arith.constant 0 : index
      %c0_19 = arith.constant 0 : index
      %40 = vector.load %arg3[%c0_18, %c0_19] : memref<1x32xbf16, #tpu.memory_space<vmem>>, vector<1x32xbf16>
      %41 = arith.extf %40 : vector<1x32xbf16> to vector<1x32xf32>
      %42 = vector.broadcast %41 : vector<1x32xf32> to vector<48x32xf32>
      %43 = arith.mulf %39, %42 : vector<48x32xf32>
      %c0_20 = arith.constant 0 : index
      %c0_21 = arith.constant 0 : index
      %44 = vector.load %arg4[%c0_20, %c0_21] : memref<1x32xbf16, #tpu.memory_space<vmem>>, vector<1x32xbf16>
      %45 = arith.extf %44 : vector<1x32xbf16> to vector<1x32xf32>
      %46 = vector.broadcast %45 : vector<1x32xf32> to vector<48x32xf32>
      %47 = arith.addf %43, %46 : vector<48x32xf32>
      %48 = arith.truncf %47 : vector<48x32xf32> to vector<48x32xbf16>
      %c0_22 = arith.constant 0 : index
      %c0_23 = arith.constant 0 : index
      %49 = vector.load %arg8[%c0_22, %c0_23] : memref<48x32xbf16, #tpu.memory_space<vmem>>, vector<48x32xbf16>
      tpu.vector_store %arg8[%c0_22, %c0_23], %48 {strides = array<i32>} : memref<48x32xbf16, #tpu.memory_space<vmem>>, vector<48x32xbf16>,
    } else {
    }
    %c0 = arith.constant 0 : index
    %c0_1 = arith.constant 0 : index
    %3 = vector.load %arg8[%c0, %c0_1] : memref<48x32xbf16, #tpu.memory_space<vmem>>, vector<48x32xbf16>
    %c0_2 = arith.constant 0 : index
    %c0_3 = arith.constant 0 : index
    %4 = vector.load %arg5[%c0_2, %c0_3] : memref<32x128xbf16, #tpu.memory_space<vmem>>, vector<32x128xbf16>
    %cst = arith.constant dense<0.000000e+00> : vector<48x128xf32>
    %5 = tpu.matmul %3, %4, %cst {dimension_numbers = #tpu.dot_dimension_numbers<[1], [0], [0], [1], [0, 0, 1, 1], [], []>} : vector<48x32xbf16>, vector<32x128xbf16>, vector<48x128xf32> -> vector<48x128xf32>
    %c0_4 = arith.constant 0 : index
    %c0_5 = arith.constant 0 : index
    %6 = vector.load %arg6[%c0_4, %c0_5] : memref<1x128xbf16, #tpu.memory_space<vmem>>, vector<1x128xbf16>
    %7 = arith.extf %6 : vector<1x128xbf16> to vector<1x128xf32>
    %8 = vector.broadcast %7 : vector<1x128xf32> to vector<48x128xf32>
    %9 = arith.addf %5, %8 : vector<48x128xf32>
    %cst_6 = arith.constant 5.000000e-01 : f32
    %10 = vector.broadcast %cst_6 : f32 to vector<48x128xf32>
    %11 = arith.mulf %10, %9 : vector<48x128xf32>
    %cst_7 = arith.constant 0.707106769 : f32
    %12 = vector.broadcast %cst_7 : f32 to vector<48x128xf32>
    %13 = arith.mulf %9, %12 : vector<48x128xf32>
    %14 = math.erf %13 : vector<48x128xf32>
    %cst_8 = arith.constant 1.000000e+00 : f32
    %15 = vector.broadcast %cst_8 : f32 to vector<48x128xf32>
    %16 = arith.addf %15, %14 : vector<48x128xf32>
    %17 = arith.mulf %11, %16 : vector<48x128xf32>
    %18 = arith.truncf %17 : vector<48x128xf32> to vector<48x128xbf16>
    %c0_9 = arith.constant 0 : index
    %c0_10 = arith.constant 0 : index
    %19 = vector.load %arg7[%c0_9, %c0_10] : memref<48x128xbf16, #tpu.memory_space<vmem>>, vector<48x128xbf16>
    tpu.vector_store %arg7[%c0_9, %c0_10], %18 {strides = array<i32>} : memref<48x128xbf16, #tpu.memory_space<vmem>>, vector<48x128xbf16>,
    return
  }
  func.func @transform_0(%arg0: i32, %arg1: i32) -> (i32, i32) {
    %c0_i32 = arith.constant 0 : i32
    %c0_i32_0 = arith.constant 0 : i32
    return %arg0, %c0_i32 : i32, i32
  }
  func.func @transform_1(%arg0: i32, %arg1: i32) -> (i32, i32) {
    %c0_i32 = arith.constant 0 : i32
    %c0_i32_0 = arith.constant 0 : i32
    %c0_i32_1 = arith.constant 0 : i32
    return %c0_i32, %c0_i32_0 : i32, i32
  }
  func.func @transform_2(%arg0: i32, %arg1: i32) -> (i32, i32) {
    %c0_i32 = arith.constant 0 : i32
    %c0_i32_0 = arith.constant 0 : i32
    %c0_i32_1 = arith.constant 0 : i32
    return %c0_i32, %c0_i32_0 : i32, i32
  }
  func.func @transform_3(%arg0: i32, %arg1: i32) -> (i32, i32) {
    %c0_i32 = arith.constant 0 : i32
    %c0_i32_0 = arith.constant 0 : i32
    return %c0_i32, %arg1 : i32, i32
  }
  func.func @transform_4(%arg0: i32, %arg1: i32) -> (i32, i32) {
    %c0_i32 = arith.constant 0 : i32
    %c0_i32_0 = arith.constant 0 : i32
    return %c0_i32, %arg1 : i32, i32
  }
  func.func @transform_5(%arg0: i32, %arg1: i32) -> (i32, i32) {
    %c0_i32 = arith.constant 0 : i32
    return %arg0, %arg1 : i32, i32
  }
}

module attributes {stable_mosaic.version = 11 : i64} {
  func.func @_matmul_residual_kernel(%arg0: i32, %arg1: i32, %arg2: i32, %arg3: memref<48x128xbf16, #tpu.memory_space<vmem>>, %arg4: memref<128x32xbf16, #tpu.memory_space<vmem>>, %arg5: memref<1x32xbf16, #tpu.memory_space<vmem>>, %arg6: memref<48x32xbf16, #tpu.memory_space<vmem>>, %arg7: memref<48x32xbf16, #tpu.memory_space<vmem>>, %arg8: memref<48x32xf32, #tpu.memory_space<vmem>>) attributes {dimension_semantics = [#tpu.dimension_semantics<parallel>, #tpu.dimension_semantics<parallel>, #tpu.dimension_semantics<arbitrary>], iteration_bounds = array<i64: 1, 1, 1>, scalar_prefetch = 0 : i64, scratch_operands = 1 : i64, tpu.core_type = #tpu.core_type<tc>, window_params = [{transform_indices = @transform_0, window_bounds = array<i64: 48, 128>}, {transform_indices = @transform_1, window_bounds = array<i64: 128, 32>}, {transform_indices = @transform_2, window_bounds = array<i64: 1, 32>}, {transform_indices = @transform_3, window_bounds = array<i64: 48, 32>}, {transform_indices = @transform_4, window_bounds = array<i64: 48, 32>}]} {
    %c0_i32 = arith.constant 0 : i32
    %0 = arith.cmpi eq, %arg2, %c0_i32 : i32
    %1 = arith.extui %0 : i1 to i32
    %c0_i32_0 = arith.constant 0 : i32
    %2 = arith.cmpi ne, %1, %c0_i32_0 : i32
    scf.if %2 {
      %cst_10 = arith.constant 0.000000e+00 : f32
      %12 = vector.broadcast %cst_10 : f32 to vector<48x32xf32>
      %c0_11 = arith.constant 0 : index
      %c0_12 = arith.constant 0 : index
      %13 = vector.load %arg8[%c0_11, %c0_12] : memref<48x32xf32, #tpu.memory_space<vmem>>, vector<48x32xf32>
      tpu.vector_store %arg8[%c0_11, %c0_12], %12 {strides = array<i32>} : memref<48x32xf32, #tpu.memory_space<vmem>>, vector<48x32xf32>,
    } else {
    }
    %c0 = arith.constant 0 : index
    %c0_1 = arith.constant 0 : index
    %3 = vector.load %arg8[%c0, %c0_1] : memref<48x32xf32, #tpu.memory_space<vmem>>, vector<48x32xf32>
    %c0_2 = arith.constant 0 : index
    %c0_3 = arith.constant 0 : index
    %4 = vector.load %arg3[%c0_2, %c0_3] : memref<48x128xbf16, #tpu.memory_space<vmem>>, vector<48x128xbf16>
    %c0_4 = arith.constant 0 : index
    %c0_5 = arith.constant 0 : index
    %5 = vector.load %arg4[%c0_4, %c0_5] : memref<128x32xbf16, #tpu.memory_space<vmem>>, vector<128x32xbf16>
    %cst = arith.constant dense<0.000000e+00> : vector<48x32xf32>
    %6 = tpu.matmul %4, %5, %cst {dimension_numbers = #tpu.dot_dimension_numbers<[1], [0], [0], [1], [0, 0, 1, 1], [], []>} : vector<48x128xbf16>, vector<128x32xbf16>, vector<48x32xf32> -> vector<48x32xf32>
    %7 = arith.addf %3, %6 : vector<48x32xf32>
    %c0_6 = arith.constant 0 : index
    %c0_7 = arith.constant 0 : index
    %8 = vector.load %arg8[%c0_6, %c0_7] : memref<48x32xf32, #tpu.memory_space<vmem>>, vector<48x32xf32>
    tpu.vector_store %arg8[%c0_6, %c0_7], %7 {strides = array<i32>} : memref<48x32xf32, #tpu.memory_space<vmem>>, vector<48x32xf32>,
    %c0_i32_8 = arith.constant 0 : i32
    %9 = arith.cmpi eq, %arg2, %c0_i32_8 : i32
    %10 = arith.extui %9 : i1 to i32
    %c0_i32_9 = arith.constant 0 : i32
    %11 = arith.cmpi ne, %10, %c0_i32_9 : i32
    scf.if %11 {
      %c0_10 = arith.constant 0 : index
      %c0_11 = arith.constant 0 : index
      %12 = vector.load %arg8[%c0_10, %c0_11] : memref<48x32xf32, #tpu.memory_space<vmem>>, vector<48x32xf32>
      %c0_12 = arith.constant 0 : index
      %c0_13 = arith.constant 0 : index
      %13 = vector.load %arg5[%c0_12, %c0_13] : memref<1x32xbf16, #tpu.memory_space<vmem>>, vector<1x32xbf16>
      %14 = arith.extf %13 : vector<1x32xbf16> to vector<1x32xf32>
      %15 = vector.broadcast %14 : vector<1x32xf32> to vector<48x32xf32>
      %16 = arith.addf %12, %15 : vector<48x32xf32>
      %c0_14 = arith.constant 0 : index
      %c0_15 = arith.constant 0 : index
      %17 = vector.load %arg6[%c0_14, %c0_15] : memref<48x32xbf16, #tpu.memory_space<vmem>>, vector<48x32xbf16>
      %18 = arith.extf %17 : vector<48x32xbf16> to vector<48x32xf32>
      %19 = arith.addf %16, %18 : vector<48x32xf32>
      %20 = arith.truncf %19 : vector<48x32xf32> to vector<48x32xbf16>
      %c0_16 = arith.constant 0 : index
      %c0_17 = arith.constant 0 : index
      %21 = vector.load %arg7[%c0_16, %c0_17] : memref<48x32xbf16, #tpu.memory_space<vmem>>, vector<48x32xbf16>
      tpu.vector_store %arg7[%c0_16, %c0_17], %20 {strides = array<i32>} : memref<48x32xbf16, #tpu.memory_space<vmem>>, vector<48x32xbf16>,
    } else {
    }
    return
  }
  func.func @transform_0(%arg0: i32, %arg1: i32, %arg2: i32) -> (i32, i32) {
    %c0_i32 = arith.constant 0 : i32
    return %arg0, %arg2 : i32, i32
  }
  func.func @transform_1(%arg0: i32, %arg1: i32, %arg2: i32) -> (i32, i32) {
    %c0_i32 = arith.constant 0 : i32
    return %arg2, %arg1 : i32, i32
  }
  func.func @transform_2(%arg0: i32, %arg1: i32, %arg2: i32) -> (i32, i32) {
    %c0_i32 = arith.constant 0 : i32
    %c0_i32_0 = arith.constant 0 : i32
    return %c0_i32, %arg1 : i32, i32
  }
  func.func @transform_3(%arg0: i32, %arg1: i32, %arg2: i32) -> (i32, i32) {
    %c0_i32 = arith.constant 0 : i32
    return %arg0, %arg1 : i32, i32
  }
  func.func @transform_4(%arg0: i32, %arg1: i32, %arg2: i32) -> (i32, i32) {
    %c0_i32 = arith.constant 0 : i32
    return %arg0, %arg1 : i32, i32
  }
}

module attributes {stable_mosaic.version = 11 : i64} {
  func.func @_ln_matmul_kernel(%arg0: i32, %arg1: i32, %arg2: memref<2x32xbf16, #tpu.memory_space<vmem>>, %arg3: memref<1x32xbf16, #tpu.memory_space<vmem>>, %arg4: memref<1x32xbf16, #tpu.memory_space<vmem>>, %arg5: memref<32x5xbf16, #tpu.memory_space<vmem>>, %arg6: memref<1x5xbf16, #tpu.memory_space<vmem>>, %arg7: memref<2x5xf32, #tpu.memory_space<vmem>>, %arg8: memref<2x32xbf16, #tpu.memory_space<vmem>>) attributes {dimension_semantics = [#tpu.dimension_semantics<parallel>, #tpu.dimension_semantics<arbitrary>], iteration_bounds = array<i64: 1, 1>, scalar_prefetch = 0 : i64, scratch_operands = 1 : i64, tpu.core_type = #tpu.core_type<tc>, window_params = [{transform_indices = @transform_0, window_bounds = array<i64: 2, 32>}, {pipeline_mode = #tpu.pipeline_mode<synchronous>, transform_indices = @transform_1, window_bounds = array<i64: 1, 32>}, {pipeline_mode = #tpu.pipeline_mode<synchronous>, transform_indices = @transform_2, window_bounds = array<i64: 1, 32>}, {transform_indices = @transform_3, window_bounds = array<i64: 32, 5>}, {transform_indices = @transform_4, window_bounds = array<i64: 1, 5>}, {transform_indices = @transform_5, window_bounds = array<i64: 2, 5>}]} {
    %c0_i32 = arith.constant 0 : i32
    %0 = arith.cmpi eq, %arg1, %c0_i32 : i32
    %1 = arith.extui %0 : i1 to i32
    %c0_i32_0 = arith.constant 0 : i32
    %2 = arith.cmpi ne, %1, %c0_i32_0 : i32
    scf.if %2 {
      %c0_8 = arith.constant 0 : index
      %c0_9 = arith.constant 0 : index
      %11 = vector.load %arg2[%c0_8, %c0_9] : memref<2x32xbf16, #tpu.memory_space<vmem>>, vector<2x32xbf16>
      %12 = arith.extf %11 : vector<2x32xbf16> to vector<2x32xf32>
      %cst_10 = arith.constant dense<0.000000e+00> : vector<2xf32>
      %13 = vector.multi_reduction <add>, %12, %cst_10 [1] : vector<2x32xf32> to vector<2xf32>
      %14 = vector.shape_cast %13 : vector<2xf32> to vector<2x1xf32>
      %cst_11 = arith.constant 3.200000e+01 : f32
      %15 = vector.broadcast %cst_11 : f32 to vector<2x1xf32>
      %16 = arith.divf %14, %15 : vector<2x1xf32>
      %17 = vector.broadcast %16 : vector<2x1xf32> to vector<2x32xf32>
      %18 = arith.subf %12, %17 : vector<2x32xf32>
      %19 = arith.mulf %18, %18 : vector<2x32xf32>
      %cst_12 = arith.constant dense<0.000000e+00> : vector<2xf32>
      %20 = vector.multi_reduction <add>, %19, %cst_12 [1] : vector<2x32xf32> to vector<2xf32>
      %21 = vector.shape_cast %20 : vector<2xf32> to vector<2x1xf32>
      %cst_13 = arith.constant 3.200000e+01 : f32
      %22 = vector.broadcast %cst_13 : f32 to vector<2x1xf32>
      %23 = arith.divf %21, %22 : vector<2x1xf32>
      %24 = vector.broadcast %16 : vector<2x1xf32> to vector<2x32xf32>
      %25 = arith.subf %12, %24 : vector<2x32xf32>
      %cst_14 = arith.constant 9.99999997E-7 : f32
      %26 = vector.broadcast %cst_14 : f32 to vector<2x1xf32>
      %27 = arith.addf %23, %26 : vector<2x1xf32>
      %28 = math.rsqrt %27 : vector<2x1xf32>
      %29 = vector.broadcast %28 : vector<2x1xf32> to vector<2x32xf32>
      %30 = arith.mulf %25, %29 : vector<2x32xf32>
      %c0_15 = arith.constant 0 : index
      %c0_16 = arith.constant 0 : index
      %31 = vector.load %arg3[%c0_15, %c0_16] : memref<1x32xbf16, #tpu.memory_space<vmem>>, vector<1x32xbf16>
      %32 = arith.extf %31 : vector<1x32xbf16> to vector<1x32xf32>
      %33 = vector.broadcast %32 : vector<1x32xf32> to vector<2x32xf32>
      %34 = arith.mulf %30, %33 : vector<2x32xf32>
      %c0_17 = arith.constant 0 : index
      %c0_18 = arith.constant 0 : index
      %35 = vector.load %arg4[%c0_17, %c0_18] : memref<1x32xbf16, #tpu.memory_space<vmem>>, vector<1x32xbf16>
      %36 = arith.extf %35 : vector<1x32xbf16> to vector<1x32xf32>
      %37 = vector.broadcast %36 : vector<1x32xf32> to vector<2x32xf32>
      %38 = arith.addf %34, %37 : vector<2x32xf32>
      %39 = arith.truncf %38 : vector<2x32xf32> to vector<2x32xbf16>
      %c0_19 = arith.constant 0 : index
      %c0_20 = arith.constant 0 : index
      %40 = vector.load %arg8[%c0_19, %c0_20] : memref<2x32xbf16, #tpu.memory_space<vmem>>, vector<2x32xbf16>
      tpu.vector_store %arg8[%c0_19, %c0_20], %39 {strides = array<i32>} : memref<2x32xbf16, #tpu.memory_space<vmem>>, vector<2x32xbf16>,
    } else {
    }
    %c0 = arith.constant 0 : index
    %c0_1 = arith.constant 0 : index
    %3 = vector.load %arg8[%c0, %c0_1] : memref<2x32xbf16, #tpu.memory_space<vmem>>, vector<2x32xbf16>
    %c0_2 = arith.constant 0 : index
    %c0_3 = arith.constant 0 : index
    %4 = vector.load %arg5[%c0_2, %c0_3] : memref<32x5xbf16, #tpu.memory_space<vmem>>, vector<32x5xbf16>
    %cst = arith.constant dense<0.000000e+00> : vector<2x5xf32>
    %5 = tpu.matmul %3, %4, %cst {dimension_numbers = #tpu.dot_dimension_numbers<[1], [0], [0], [1], [0, 0, 1, 1], [], []>} : vector<2x32xbf16>, vector<32x5xbf16>, vector<2x5xf32> -> vector<2x5xf32>
    %c0_4 = arith.constant 0 : index
    %c0_5 = arith.constant 0 : index
    %6 = vector.load %arg6[%c0_4, %c0_5] : memref<1x5xbf16, #tpu.memory_space<vmem>>, vector<1x5xbf16>
    %7 = arith.extf %6 : vector<1x5xbf16> to vector<1x5xf32>
    %8 = vector.broadcast %7 : vector<1x5xf32> to vector<2x5xf32>
    %9 = arith.addf %5, %8 : vector<2x5xf32>
    %c0_6 = arith.constant 0 : index
    %c0_7 = arith.constant 0 : index
    %10 = vector.load %arg7[%c0_6, %c0_7] : memref<2x5xf32, #tpu.memory_space<vmem>>, vector<2x5xf32>
    tpu.vector_store %arg7[%c0_6, %c0_7], %9 {strides = array<i32>} : memref<2x5xf32, #tpu.memory_space<vmem>>, vector<2x5xf32>,
    return
  }
  func.func @transform_0(%arg0: i32, %arg1: i32) -> (i32, i32) {
    %c0_i32 = arith.constant 0 : i32
    %c0_i32_0 = arith.constant 0 : i32
    return %arg0, %c0_i32 : i32, i32
  }
  func.func @transform_1(%arg0: i32, %arg1: i32) -> (i32, i32) {
    %c0_i32 = arith.constant 0 : i32
    %c0_i32_0 = arith.constant 0 : i32
    %c0_i32_1 = arith.constant 0 : i32
    return %c0_i32, %c0_i32_0 : i32, i32
  }
  func.func @transform_2(%arg0: i32, %arg1: i32) -> (i32, i32) {
    %c0_i32 = arith.constant 0 : i32
    %c0_i32_0 = arith.constant 0 : i32
    %c0_i32_1 = arith.constant 0 : i32
    return %c0_i32, %c0_i32_0 : i32, i32
  }
  func.func @transform_3(%arg0: i32, %arg1: i32) -> (i32, i32) {
    %c0_i32 = arith.constant 0 : i32
    %c0_i32_0 = arith.constant 0 : i32
    return %c0_i32, %arg1 : i32, i32
  }
  func.func @transform_4(%arg0: i32, %arg1: i32) -> (i32, i32) {
    %c0_i32 = arith.constant 0 : i32
    %c0_i32_0 = arith.constant 0 : i32
    return %c0_i32, %arg1 : i32, i32
  }
  func.func @transform_5(%arg0: i32, %arg1: i32) -> (i32, i32) {
    %c0_i32 = arith.constant 0 : i32
    return %arg0, %arg1 : i32, i32
  }
}

</mosaic_0001>

<bundles_post_ra>
// kernel: vit_forward.15
= control target key start
LH: loop header
LB: loop body
LE: loop exit
PB: predicated region body
PF: predicated region fallthrough
CT: control target
= control target key end

     0   :  { %vm22_vm0 = vcmask 261120   ;;  %v291_v0 = vmov 0.0   ;;  %vm292_vm1 = vmmov 0   ;;  %v162_v6 = vlaneseq  ;;  %s384_s1 = inlined_call_operand.vmem [shape: bf16[32,32], index: 1, kind: input, shape index: {}]   ;;  %s385_s0 = inlined_call_operand.vmem [shape: bf16[48,32], index: 0, kind: input, shape index: {}]   ;;  %s386_s2 = inlined_call_operand.vmem [shape: bf16[1,32], index: 2, kind: input, shape index: {}]   ;;  %s387_s3 = inlined_call_operand.vmem [shape: bf16[48,32], index: 3, kind: input, shape index: {}, may-alias: {3,4}]   ;;  %s388_s4 = inlined_call_operand.vmem [shape: bf16[48,32], index: 4, kind: output, shape index: {}, may-alias: {3,4}]  }
   0x1   :  { %280 = vmatprep.subr.bf16.mxu1 %v291_v0  ;;  %v286_v1 = vld [vmem:[%s384_s1] sm:$0xff]   ;;  %264 = vmatprep.subr.bf16.mxu0 %v291_v0  ;;  %23 = vst.msk [vmem:[#allocation2] sm:$0xff] %vm22_vm0, %v291_v0  ;;  %24 = vst.msk [vmem:[#allocation2 + $0x8] sm:$0xff] %vm22_vm0, %v291_v0  ;;  %v287_v2 = vld [vmem:[%s384_s1 + $0x8] sm:$0xff]   ;;  %vm214_vm2 = vcmask 257024  }
   0x2   :  { %25 = vst.msk [vmem:[#allocation2 + $0x10] sm:$0xff] %vm22_vm0, %v291_v0  ;;  %26 = vst.msk [vmem:[#allocation2 + $0x18] sm:$0xff] %vm22_vm0, %v291_v0  ;;  %272 = vmatprep.mubr.msk.bf16.mxu1 %vm292_vm1, %v291_v0  ;;  %268 = vmatprep.mubr.msk.bf16.mxu0 %vm292_vm1, %v291_v0  ;;  %v288_v3 = vld [vmem:[%s385_s0 + $0x8] sm:$0xff]   ;;  %v289_v4 = vld [vmem:[%s385_s0] sm:$0xff]   ;;  %v163_v9 = vshrl.u32 %v162_v6, 7 }
   0x3   :  { %27 = vst.msk [vmem:[#allocation2 + $0x20] sm:$0xff] %vm22_vm0, %v291_v0  ;;  %28 = vst.msk [vmem:[#allocation2 + $0x28] sm:$0xff] %vm22_vm0, %v291_v0  ;;  %282 = vmatpush3.bf16.msra.mxu1 %v286_v1  ;;  %265 = vmatpush3.bf16.msra.mxu0 %v286_v1  ;;  %v290_v5 = vld [vmem:[%s385_s0 + $0x10] sm:$0xff]   ;;  %v160_v11 = vld [vmem:[%s386_s2] sm:$0x1] }
   0x4   :  { %281 = vmatprep.subr.bf16.mxu1 %v291_v0  ;;  %266 = vmatprep.subr.bf16.mxu0 %v291_v0  ;;  %v161_v21 = vunpack.c.l.bf16 %v160_v11  ;;  %v164_v22 = vsub.s32 0, %v163_v9  ;;  %v257_v27 = vld [vmem:[%s387_s3 + $0x8] sm:$0xff]   ;;  %v246_v28 = vld [vmem:[%s387_s3] sm:$0xff]   ;;  %v258_v52 = vld [vmem:[%s387_s3 + $0x10] sm:$0xff]  }
   0x5   :  { %v251_v33 = vunpack.c.l.bf16 %v257_v27  ;;  %v247_v34 = vunpack.c.l.bf16 %v246_v28  ;;  %v252_v38 = vunpack.c.h.bf16 %v257_v27  ;;  %v248_v43 = vunpack.c.h.bf16 %v246_v28 }
   0x6   :  { %v165_v30 = vrot.slane %v161_v21, %v164_v22  ;;  %v255_v59 = vunpack.c.l.bf16 %v258_v52  ;;  %v256_v62 = vunpack.c.h.bf16 %v258_v52 }
   0x7   :  { %283 = vmatpush3.bf16.msra.mxu1 %v287_v2  ;;  %267 = vmatpush3.bf16.msra.mxu0 %v287_v2 }
   0x8   :  { %v29_v8 = vld [vmem:[#allocation2] sm:$0xff]  ;;  %v30_v14 = vld [vmem:[#allocation2 + $0x8] sm:$0xff] }
   0x9   :  { %v31_v7 = vld [vmem:[#allocation2 + $0x10] sm:$0xff]  ;;  %v32_v12 = vld [vmem:[#allocation2 + $0x18] sm:$0xff] }
   0xa   :  { %273 = vmatmul.mubr.msk.bf16.vlgmr.msra.gmra.mrb[0].mxu1 %vm22_vm0, %v288_v3  ;;  %269 = vmatmul.mubr.msk.bf16.vlgmr.msra.gmra.mrb[0].mxu0 %vm22_vm0, %v289_v4  ;;  %v33_v29 = vld [vmem:[#allocation2 + $0x20] sm:$0xff]  ;;  %v34_v32 = vld [vmem:[#allocation2 + $0x28] sm:$0xff] }
   0xb   :  { %276 = vmatprep.mubr.msk.bf16.mxu1 %vm292_vm1, %v291_v0 }
  0x12   :  { %277 = vmatmul.mubr.msk.bf16.gmra.mrb[4].mxu1 %vm22_vm0, %v290_v5 }
  0xdd   :  { %v124_v10 = vpop.f32.mrb[0].mxu1  ;;  %v116_v13 = vpop.f32.mrb[0].mxu0 }
  0xde   :  { %v141_v15 = vadd.f32 %v124_v10, %v31_v7  ;;  %v274_v16 = vpop.f32.mrb[1].mxu1  ;;  %v139_v17 = vadd.f32 %v116_v13, %v29_v8  ;;  %v270_v18 = vpop.f32.mrb[1].mxu0 }
  0xdf   :  { %v127_v19 = vpop.f32.mrb[2].mxu1  ;;  %v119_v20 = vpop.f32.mrb[2].mxu0 }
  0xe0   :  { %147 = vst.msk [vmem:[#allocation2 + $0x10] sm:$0xff] %vm22_vm0, %v141_v15  ;;  %v142_v23 = vadd.f32 %v127_v19, %v32_v12  ;;  %v275_v24 = vpop.f32.mrb[3].mxu1  ;;  %145 = vst.msk [vmem:[#allocation2] sm:$0xff] %vm22_vm0, %v139_v17  ;;  %v140_v25 = vadd.f32 %v119_v20, %v30_v14  ;;  %v271_v26 = vpop.f32.mrb[3].mxu0 }
  0xe2   :  { %148 = vst.msk [vmem:[#allocation2 + $0x18] sm:$0xff] %vm22_vm0, %v142_v23  ;;  %146 = vst.msk [vmem:[#allocation2 + $0x8] sm:$0xff] %vm22_vm0, %v140_v25 }
  0xe5   :  { %v132_v31 = vpop.f32.mrb[4].mxu1 }
  0xe6   :  { %v143_v35 = vadd.f32 %v132_v31, %v33_v29  ;;  %v278_v36 = vpop.f32.mrb[5].mxu1 }
  0xe7   :  { %v156_v37 = vld [vmem:[#allocation2 + $0x10] sm:$0xff]  ;;  %v154_v39 = vld [vmem:[#allocation2] sm:$0xff]  ;;  %v135_v40 = vpop.f32.mrb[6].mxu1 }
  0xe8   :  { %v168_v41 = vadd.f32 %v165_v30, %v156_v37  ;;  %v166_v42 = vadd.f32 %v165_v30, %v154_v39  ;;  %149 = vst.msk [vmem:[#allocation2 + $0x20] sm:$0xff] %vm22_vm0, %v143_v35  ;;  %v144_v44 = vadd.f32 %v135_v40, %v34_v32  ;;  %v279_v45 = vpop.f32.mrb[7].mxu1 }
  0xe9   :  { %v157_v46 = vld [vmem:[#allocation2 + $0x18] sm:$0xff]  ;;  %v155_v47 = vld [vmem:[#allocation2 + $0x8] sm:$0xff] }
  0xea   :  { %v186_v48 = vadd.f32 %v251_v33, %v168_v41  ;;  %v169_v49 = vadd.f32 %v165_v30, %v157_v46  ;;  %v184_v50 = vadd.f32 %v247_v34, %v166_v42  ;;  %v167_v51 = vadd.f32 %v165_v30, %v155_v47  ;;  %150 = vst.msk [vmem:[#allocation2 + $0x28] sm:$0xff] %vm22_vm0, %v144_v44 }
  0xec   :  { %v241_v53 = vpack.c.bf16 %v186_v48, %v186_v48  ;;  %v187_v54 = vadd.f32 %v252_v38, %v169_v49  ;;  %v239_v55 = vpack.c.bf16 %v184_v50, %v184_v50  ;;  %v185_v56 = vadd.f32 %v248_v43, %v167_v51 }
  0xee   :  { %217 = vst.msk [vmem:[%s388_s4 + $0x8] sm:$0xf] %vm214_vm2, %v241_v53  ;;  %v242_v57 = vpack.c.bf16 %v187_v54, %v187_v54  ;;  %215 = vst.msk [vmem:[%s388_s4] sm:$0xf] %vm214_vm2, %v239_v55  ;;  %v240_v58 = vpack.c.bf16 %v185_v56, %v185_v56 }
  0xef   :  { %v158_v60 = vld [vmem:[#allocation2 + $0x20] sm:$0xff] }
  0xf0   :  { %218 = vst.msk [vmem:[%s388_s4 + $0xc] sm:$0xf] %vm214_vm2, %v242_v57  ;;  %216 = vst.msk [vmem:[%s388_s4 + $0x4] sm:$0xf] %vm214_vm2, %v240_v58  ;;  %v170_v61 = vadd.f32 %v165_v30, %v158_v60 }
  0xf1   :  { %v159_v63 = vld [vmem:[#allocation2 + $0x28] sm:$0xff] }
  0xf2   :  { %v188_v0 = vadd.f32 %v255_v59, %v170_v61  ;;  %v171_v1 = vadd.f32 %v165_v30, %v159_v63 }
  0xf4   :  { %v243_v2 = vpack.c.bf16 %v188_v0, %v188_v0  ;;  %v189_v3 = vadd.f32 %v256_v62, %v171_v1 }
  0xf6   :  { %219 = vst.msk [vmem:[%s388_s4 + $0x10] sm:$0xf] %vm214_vm2, %v243_v2  ;;  %v244_v4 = vpack.c.bf16 %v189_v3, %v189_v3 }
  0xf8   :  { %220 = vst.msk [vmem:[%s388_s4 + $0x14] sm:$0xf] %vm214_vm2, %v244_v4 }

// kernel: vit_forward.12
= control target key start
LH: loop header
LB: loop body
LE: loop exit
PB: predicated region body
PF: predicated region fallthrough
CT: control target
= control target key end

     0   :  { %vm19_vm0 = vcmask 261120   ;;  %v222_v1 = vmov 0.0   ;;  %vm74_vm1 = vcmask 523264   ;;  %v148_v7 = vlaneseq  ;;  %s284_s1 = inlined_call_operand.vmem [shape: bf16[64,32], index: 1, kind: input, shape index: {}]   ;;  %s285_s0 = inlined_call_operand.vmem [shape: bf16[32,64], index: 0, kind: input, shape index: {}]   ;;  %s286_s2 = inlined_call_operand.vmem [shape: bf16[1,32], index: 2, kind: input, shape index: {}]   ;;  %s287_s3 = inlined_call_operand.vmem [shape: bf16[32,32], index: 3, kind: output, shape index: {}]  }
   0x1   :  { %v216_v0 = vld [vmem:[%s284_s1] sm:$0xff]   ;;  %22 = vst.msk [vmem:[#allocation2 + $0x10] sm:$0xff] %vm19_vm0, %v222_v1  ;;  %20 = vst.msk [vmem:[#allocation2] sm:$0xff] %vm19_vm0, %v222_v1  ;;  %v217_v2 = vld [vmem:[%s284_s1 + $0x8] sm:$0xff]   ;;  %vm172_vm2 = vcmask 257024  }
   0x2   :  { %21 = vst.msk [vmem:[#allocation2 + $0x8] sm:$0xff] %vm19_vm0, %v222_v1  ;;  %23 = vst.msk [vmem:[#allocation2 + $0x18] sm:$0xff] %vm19_vm0, %v222_v1  ;;  %203 = vmatprep.subr.bf16.mxu0 %v216_v0  ;;  %v218_v3 = vld [vmem:[%s284_s1 + $0x10] sm:$0xff]   ;;  %v220_v4 = vld [vmem:[%s285_s0] sm:$0xff]   ;;  %v149_v9 = vshrl.u32 %v148_v7, 7 }
   0x3   :  { %204 = vmatpush3.bf16.msra.mxu0 %v216_v0  ;;  %211 = vmatprep.mubr.msk.bf16.mxu0 %vm74_vm1, %v220_v4  ;;  %v219_v5 = vld [vmem:[%s284_s1 + $0x18] sm:$0xff]   ;;  %v221_v6 = vld [vmem:[%s285_s0 + $0x8] sm:$0xff]   ;;  %v146_v12 = vld [vmem:[%s286_s2] sm:$0x1] }
   0x4   :  { %205 = vmatprep.subr.bf16.mxu0 %v217_v2  ;;  %v147_v19 = vunpack.c.l.bf16 %v146_v12  ;;  %v150_v20 = vsub.s32 0, %v149_v9 }
   0x6   :  { %v151_v24 = vrot.slane %v147_v19, %v150_v20 }
   0x7   :  { %206 = vmatpush3.bf16.msra.mxu0 %v217_v2 }
   0x8   :  { %207 = vmatprep.subr.bf16.mxu0 %v218_v3  ;;  %v26_v8 = vld [vmem:[#allocation2 + $0x10] sm:$0xff]  ;;  %v24_v10 = vld [vmem:[#allocation2] sm:$0xff] }
   0x9   :  { %v27_v13 = vld [vmem:[#allocation2 + $0x18] sm:$0xff]  ;;  %v25_v16 = vld [vmem:[#allocation2 + $0x8] sm:$0xff] }
   0xb   :  { %208 = vmatpush3.bf16.msra.mxu0 %v218_v3 }
   0xc   :  { %209 = vmatprep.subr.bf16.mxu0 %v219_v5 }
   0xf   :  { %210 = vmatpush3.bf16.msra.mxu0 %v219_v5 }
  0x12   :  { %212 = vmatmul.mubr.msk.bf16.vlgmr.msra.gmra.mrb[0].mxu0 %vm74_vm1, %v221_v6 }
  0xe5   :  { %v213_v11 = vpop.f32.mrb[0].mxu0 }
  0xe6   :  { %v132_v14 = vadd.f32 %v213_v11, %v26_v8  ;;  %v115_v15 = vpop.f32.mrb[1].mxu0 }
  0xe7   :  { %v130_v17 = vadd.f32 %v115_v15, %v24_v10  ;;  %v214_v18 = vpop.f32.mrb[2].mxu0 }
  0xe8   :  { %137 = vst.msk [vmem:[#allocation2 + $0x10] sm:$0xff] %vm19_vm0, %v132_v14  ;;  %v133_v21 = vadd.f32 %v214_v18, %v27_v13  ;;  %v118_v22 = vpop.f32.mrb[3].mxu0 }
  0xe9   :  { %135 = vst.msk [vmem:[#allocation2] sm:$0xff] %vm19_vm0, %v130_v17  ;;  %v131_v23 = vadd.f32 %v118_v22, %v25_v16 }
  0xea   :  { %138 = vst.msk [vmem:[#allocation2 + $0x18] sm:$0xff] %vm19_vm0, %v133_v21 }
  0xeb   :  { %136 = vst.msk [vmem:[#allocation2 + $0x8] sm:$0xff] %vm19_vm0, %v131_v23 }
  0xef   :  { %v144_v25 = vld [vmem:[#allocation2 + $0x10] sm:$0xff] }
  0xf0   :  { %v154_v26 = vadd.f32 %v151_v24, %v144_v25  ;;  %v142_v27 = vld [vmem:[#allocation2] sm:$0xff] }
  0xf1   :  { %v152_v28 = vadd.f32 %v151_v24, %v142_v27  ;;  %v145_v29 = vld [vmem:[#allocation2 + $0x18] sm:$0xff] }
  0xf2   :  { %v195_v30 = vpack.c.bf16 %v154_v26, %v154_v26  ;;  %v155_v31 = vadd.f32 %v151_v24, %v145_v29  ;;  %v143_v32 = vld [vmem:[#allocation2 + $0x8] sm:$0xff] }
  0xf3   :  { %v193_v33 = vpack.c.bf16 %v152_v28, %v152_v28  ;;  %v153_v34 = vadd.f32 %v151_v24, %v143_v32 }
  0xf4   :  { %175 = vst.msk [vmem:[%s287_s3 + $0x8] sm:$0xf] %vm172_vm2, %v195_v30  ;;  %v196_v35 = vpack.c.bf16 %v155_v31, %v155_v31 }
  0xf5   :  { %173 = vst.msk [vmem:[%s287_s3] sm:$0xf] %vm172_vm2, %v193_v33  ;;  %v194_v36 = vpack.c.bf16 %v153_v34, %v153_v34 }
  0xf6   :  { %176 = vst.msk [vmem:[%s287_s3 + $0xc] sm:$0xf] %vm172_vm2, %v196_v35 }
  0xf7   :  { %174 = vst.msk [vmem:[%s287_s3 + $0x4] sm:$0xf] %vm172_vm2, %v194_v36 }

// kernel: vit_forward.13
= control target key start
LH: loop header
LB: loop body
LE: loop exit
PB: predicated region body
PF: predicated region fallthrough
CT: control target
= control target key end

     0   :  { %vm37_vm0 = vcmask 261120   ;;  %v346_v46 = vmov 0.0   ;;  %vm347_vm1 = vmmov 0   ;;  %v119_v53 = vlaneseq  ;;  %s484_s0 = inlined_call_operand.vmem [shape: bf16[48,32], index: 0, kind: input, shape index: {}]   ;;  %s485_s3 = inlined_call_operand.vmem [shape: bf16[32,96], index: 3, kind: input, shape index: {}]   ;;  %s486_s1 = inlined_call_operand.vmem [shape: bf16[1,32], index: 1, kind: input, shape index: {}]   ;;  %s487_s2 = inlined_call_operand.vmem [shape: bf16[1,32], index: 2, kind: input, shape index: {}]   ;;  %s488_s4 = inlined_call_operand.vmem [shape: bf16[1,96], index: 4, kind: input, shape index: {}]   ;;  %s489_s5 = inlined_call_operand.vmem [shape: bf16[48,96], index: 5, kind: output, shape index: {}]  }
   0x1   :  { %v303_v0 = vld [vmem:[%s484_s0 + $0x8] sm:$0xff]   ;;  %v292_v1 = vld [vmem:[%s484_s0] sm:$0xff]   ;;  %v304_v5 = vld [vmem:[%s484_s0 + $0x10] sm:$0xff]   ;;  %326 = vmatprep.subr.bf16.mxu1 %v346_v46  ;;  %310 = vmatprep.subr.bf16.mxu0 %v346_v46  ;;  %vm263_vm2 = vcmask 781312  }
   0x2   :  { %v297_v2 = vunpack.c.l.bf16 %v303_v0  ;;  %v298_v3 = vunpack.c.h.bf16 %v303_v0  ;;  %v293_v4 = vunpack.c.l.bf16 %v292_v1  ;;  %v294_v6 = vunpack.c.h.bf16 %v292_v1  ;;  %v332_v45 = vld [vmem:[%s485_s3] sm:$0xff]   ;;  %v333_v47 = vld [vmem:[%s485_s3 + $0x8] sm:$0xff]   ;;  %318 = vmatprep.mubr.msk.bf16.mxu1 %vm347_vm1, %v346_v46  ;;  %314 = vmatprep.mubr.msk.bf16.mxu0 %vm347_vm1, %v346_v46 }
   0x3   :  { %v301_v10 = vunpack.c.l.bf16 %v304_v5  ;;  %v302_v12 = vunpack.c.h.bf16 %v304_v5  ;;  %328 = vmatpush3.bf16.msra.mxu1 %v332_v45  ;;  %311 = vmatpush3.bf16.msra.mxu0 %v332_v45  ;;  %v120_v60 = vshrl.u32 %v119_v53, 7  ;;  %v117_v63 = vld [vmem:[%s486_s1] sm:$0x1] }
   0x4   :  { %v44_v7 = vsel %vm37_vm0, %v297_v2, 0.0  ;;  %v38_v8 = vsel %vm37_vm0, %v293_v4, 0.0  ;;  %v47_v9 = vsel %vm37_vm0, %v298_v3, 0.0  ;;  %v41_v11 = vsel %vm37_vm0, %v294_v6, 0.0  ;;  %327 = vmatprep.subr.bf16.mxu1 %v346_v46  ;;  %312 = vmatprep.subr.bf16.mxu0 %v346_v46 }
   0x5   :  { %45 = vadd.xlane.f32.xlu0 %v44_v7  ;;  %39 = vadd.xlane.f32.xlu1 %v38_v8  ;;  %v50_v13 = vsel %vm37_vm0, %v301_v10, 0.0  ;;  %v53_v14 = vsel %vm37_vm0, %v302_v12, 0.0 }
   0x7   :  { %329 = vmatpush3.bf16.msra.mxu1 %v333_v47  ;;  %313 = vmatpush3.bf16.msra.mxu0 %v333_v47 }
   0x9   :  { %48 = vadd.xlane.f32.xlu0 %v47_v9  ;;  %42 = vadd.xlane.f32.xlu1 %v41_v11 }
   0xd   :  { %51 = vadd.xlane.f32.xlu0 %v50_v13  ;;  %54 = vadd.xlane.f32.xlu1 %v53_v14 }
  0x92   :  { %v46_v15 = vpop.xlane.xlu0 %45  ;;  %v40_v16 = vpop.xlane.xlu1 %39 }
  0x93   :  { %v59_v17 = vmul.f32 0.03125, %v46_v15  ;;  %v57_v18 = vmul.f32 0.03125, %v40_v16 }
  0x95   :  { %v393_v19 = vsub.f32 %v297_v2, %v59_v17  ;;  %v395_v20 = vsub.f32 %v293_v4, %v57_v18  ;;  %v121_v4 = vsub.s32 0, %v120_v60 }
  0x96   :  { %v49_v21 = vpop.xlane.xlu0 %48  ;;  %v43_v22 = vpop.xlane.xlu1 %42 }
  0x97   :  { %v60_v23 = vmul.f32 0.03125, %v49_v21  ;;  %v71_v24 = vmul.f32 %v393_v19, %v393_v19  ;;  %v58_v25 = vmul.f32 0.03125, %v43_v22  ;;  %v69_v26 = vmul.f32 %v395_v20, %v395_v20 }
  0x99   :  { %v401_v27 = vsub.f32 %v298_v3, %v60_v23  ;;  %v81_v28 = vsel %vm37_vm0, %v71_v24, 0.0  ;;  %v404_v29 = vsub.f32 %v294_v6, %v58_v25  ;;  %v75_v31 = vsel %vm37_vm0, %v69_v26, 0.0  ;;  %v129_v6 = vld [vmem:[%s487_s2] sm:$0x1] }
  0x9a   :  { %82 = vadd.xlane.f32.xlu0 %v81_v28  ;;  %v52_v30 = vpop.xlane.xlu0 %51  ;;  %v55_v32 = vpop.xlane.xlu1 %54  ;;  %v118_v3 = vunpack.c.l.bf16 %v117_v63 }
  0x9b   :  { %v61_v33 = vmul.f32 0.03125, %v52_v30  ;;  %v72_v34 = vmul.f32 %v401_v27, %v401_v27  ;;  %v62_v35 = vmul.f32 0.03125, %v55_v32  ;;  %v70_v36 = vmul.f32 %v404_v29, %v404_v29 }
  0x9c   :  { %v122_v9 = vrot.slane %v118_v3, %v121_v4 }
  0x9d   :  { %v411_v37 = vsub.f32 %v301_v10, %v61_v33  ;;  %v84_v38 = vsel %vm37_vm0, %v72_v34, 0.0  ;;  %v414_v39 = vsub.f32 %v302_v12, %v62_v35  ;;  %v78_v41 = vsel %vm37_vm0, %v70_v36, 0.0 }
  0x9e   :  { %85 = vadd.xlane.f32.xlu1 %v84_v38  ;;  %76 = vadd.xlane.f32.xlu0 %v75_v31  ;;  %v130_v10 = vunpack.c.l.bf16 %v129_v6 }
  0x9f   :  { %v73_v40 = vmul.f32 %v411_v37, %v411_v37  ;;  %v74_v42 = vmul.f32 %v414_v39, %v414_v39 }
  0xa0   :  { %v134_v14 = vrot.slane %v130_v10, %v121_v4 }
  0xa1   :  { %v87_v43 = vsel %vm37_vm0, %v73_v40, 0.0  ;;  %v90_v44 = vsel %vm37_vm0, %v74_v42, 0.0 }
  0xa2   :  { %88 = vadd.xlane.f32.xlu0 %v87_v43  ;;  %79 = vadd.xlane.f32.xlu1 %v78_v41  ;;  %v154_v41 = vld [vmem:[%s488_s4] sm:$0x1] }
  0xa3   :  { %v155_v42 = vunpack.c.l.bf16 %v154_v41 }
  0xa5   :  { %v159_v43 = vrot.slane %v155_v42, %v121_v4 }
  0xa6   :  { %91 = vadd.xlane.f32.xlu1 %v90_v44 }
 0x127   :  { %v83_v48 = vpop.xlane.xlu0 %82 }
 0x128   :  { %v95_v49 = vmul.f32 0.03125, %v83_v48 }
 0x12a   :  { %v101_v50 = vadd.f32 1e-06, %v95_v49 }
 0x12b   :  { %v77_v51 = vpop.xlane.xlu0 %76  ;;  %v86_v52 = vpop.xlane.xlu1 %85 }
 0x12c   :  { %334 = vrsqrt.f32 %v101_v50  ;;  %v93_v54 = vmul.f32 0.03125, %v77_v51  ;;  %v96_v55 = vmul.f32 0.03125, %v86_v52 }
 0x12e   :  { %v99_v56 = vadd.f32 1e-06, %v93_v54  ;;  %v102_v57 = vadd.f32 1e-06, %v96_v55 }
 0x12f   :  { %v89_v58 = vpop.xlane.xlu0 %88  ;;  %v80_v59 = vpop.xlane.xlu1 %79 }
 0x130   :  { %336 = vrsqrt.f32 %v99_v56  ;;  %v97_v61 = vmul.f32 0.03125, %v89_v58  ;;  %v94_v62 = vmul.f32 0.03125, %v80_v59 }
 0x131   :  { %338 = vrsqrt.f32 %v102_v57 }
 0x132   :  { %v103_v0 = vadd.f32 1e-06, %v97_v61  ;;  %v100_v1 = vadd.f32 1e-06, %v94_v62 }
 0x133   :  { %v92_v2 = vpop.xlane.xlu1 %91 }
 0x134   :  { %340 = vrsqrt.f32 %v103_v0  ;;  %v98_v5 = vmul.f32 0.03125, %v92_v2 }
 0x135   :  { %342 = vrsqrt.f32 %v100_v1 }
 0x136   :  { %v335_v7 = vpop.eup %334  ;;  %v104_v8 = vadd.f32 1e-06, %v98_v5 }
 0x137   :  { %v113_v11 = vmul.f32 %v335_v7, %v393_v19 }
 0x138   :  { %344 = vrsqrt.f32 %v104_v8 }
 0x139   :  { %v125_v15 = vmul.f32 %v122_v9, %v113_v11 }
 0x13a   :  { %v337_v12 = vpop.eup %336 }
 0x13b   :  { %v339_v13 = vpop.eup %338  ;;  %v111_v16 = vmul.f32 %v337_v12, %v395_v20  ;;  %v137_v24 = vadd.f32 %v134_v14, %v125_v15 }
 0x13c   :  { %v114_v17 = vmul.f32 %v339_v13, %v401_v27 }
 0x13d   :  { %v123_v25 = vmul.f32 %v122_v9, %v111_v16 }
 0x13e   :  { %v341_v18 = vpop.eup %340  ;;  %v126_v21 = vmul.f32 %v122_v9, %v114_v17 }
 0x13f   :  { %v343_v22 = vpop.eup %342  ;;  %v115_v23 = vmul.f32 %v341_v18, %v411_v37  ;;  %v135_v34 = vadd.f32 %v134_v14, %v123_v25 }
 0x140   :  { %v138_v26 = vadd.f32 %v134_v14, %v126_v21  ;;  %v112_v28 = vmul.f32 %v343_v22, %v404_v29 }
 0x141   :  { %v127_v32 = vmul.f32 %v122_v9, %v115_v23 }
 0x142   :  { %v345_v19 = vpop.eup %344  ;;  %v142_v30 = vpack.c.bf16 %v138_v26, %v137_v24  ;;  %v124_v31 = vmul.f32 %v122_v9, %v112_v28 }
 0x143   :  { %v116_v33 = vmul.f32 %v345_v19, %v414_v39  ;;  %v139_v36 = vadd.f32 %v134_v14, %v127_v32 }
 0x144   :  { %145 = vst.msk [vmem:[#allocation2 + $0x8] sm:$0xff] %vm37_vm0, %v142_v30  ;;  %v136_v20 = vadd.f32 %v134_v14, %v124_v31 }
 0x145   :  { %v128_v27 = vmul.f32 %v122_v9, %v116_v33 }
 0x146   :  { %v141_v35 = vpack.c.bf16 %v136_v20, %v135_v34 }
 0x147   :  { %v140_v38 = vadd.f32 %v134_v14, %v128_v27 }
 0x148   :  { %144 = vst.msk [vmem:[#allocation2] sm:$0xff] %vm37_vm0, %v141_v35 }
 0x149   :  { %v143_v37 = vpack.c.bf16 %v140_v38, %v139_v36 }
 0x14b   :  { %146 = vst.msk [vmem:[#allocation2 + $0x10] sm:$0xff] %vm37_vm0, %v143_v37  ;;  %v148_v29 = vld [vmem:[#allocation2 + $0x8] sm:$0xff] }
 0x14c   :  { %319 = vmatmul.mubr.msk.bf16.vlgmr.msra.gmra.mrb[0].mxu1 %vm37_vm0, %v148_v29 }
 0x14d   :  { %322 = vmatprep.mubr.msk.bf16.mxu1 %vm347_vm1, %v346_v46 }
 0x14f   :  { %v147_v39 = vld [vmem:[#allocation2] sm:$0xff] }
 0x150   :  { %315 = vmatmul.mubr.msk.bf16.vlgmr.msra.gmra.mrb[0].mxu0 %vm37_vm0, %v147_v39 }
 0x152   :  { %v149_v40 = vld [vmem:[#allocation2 + $0x10] sm:$0xff] }
 0x154   :  { %323 = vmatmul.mubr.msk.bf16.gmra.mrb[4].mxu1 %vm37_vm0, %v149_v40 }
 0x21f   :  { %v224_v44 = vpop.f32.mrb[0].mxu1 }
 0x220   :  { %v225_v45 = vadd.f32 %v224_v44, %v159_v43  ;;  %v320_v47 = vpop.f32.mrb[1].mxu1 }
 0x221   :  { %v227_v48 = vpop.f32.mrb[2].mxu1 }
 0x222   :  { %v287_v49 = vpack.c.bf16 %v225_v45, %v225_v45  ;;  %v228_v50 = vadd.f32 %v227_v48, %v159_v43  ;;  %v321_v46 = vpop.f32.mrb[3].mxu1 }
 0x223   :  { %v216_v51 = vpop.f32.mrb[0].mxu0 }
 0x224   :  { %266 = vst.msk [vmem:[%s489_s5 + $0x8] sm:$0xf] %vm263_vm2, %v287_v49  ;;  %v288_v52 = vpack.c.bf16 %v228_v50, %v228_v50  ;;  %v217_v53 = vadd.f32 %v216_v51, %v159_v43  ;;  %v316_v54 = vpop.f32.mrb[1].mxu0 }
 0x225   :  { %v219_v55 = vpop.f32.mrb[2].mxu0 }
 0x226   :  { %267 = vst.msk [vmem:[%s489_s5 + $0xc] sm:$0xf] %vm263_vm2, %v288_v52  ;;  %v285_v56 = vpack.c.bf16 %v217_v53, %v217_v53  ;;  %v220_v57 = vadd.f32 %v219_v55, %v159_v43  ;;  %v317_v58 = vpop.f32.mrb[3].mxu0 }
 0x227   :  { %v232_v59 = vpop.f32.mrb[4].mxu1 }
 0x228   :  { %264 = vst.msk [vmem:[%s489_s5] sm:$0xf] %vm263_vm2, %v285_v56  ;;  %v286_v60 = vpack.c.bf16 %v220_v57, %v220_v57  ;;  %v233_v61 = vadd.f32 %v232_v59, %v159_v43  ;;  %v324_v62 = vpop.f32.mrb[5].mxu1 }
 0x229   :  { %v235_v63 = vpop.f32.mrb[6].mxu1 }
 0x22a   :  { %265 = vst.msk [vmem:[%s489_s5 + $0x4] sm:$0xf] %vm263_vm2, %v286_v60  ;;  %v289_v0 = vpack.c.bf16 %v233_v61, %v233_v61  ;;  %v236_v1 = vadd.f32 %v235_v63, %v159_v43  ;;  %v325_v2 = vpop.f32.mrb[7].mxu1 }
 0x22c   :  { %268 = vst.msk [vmem:[%s489_s5 + $0x10] sm:$0xf] %vm263_vm2, %v289_v0  ;;  %v290_v3 = vpack.c.bf16 %v236_v1, %v236_v1 }
 0x22e   :  { %269 = vst.msk [vmem:[%s489_s5 + $0x14] sm:$0xf] %vm263_vm2, %v290_v3 }

// kernel: vit_forward.14
= control target key start
LH: loop header
LB: loop body
LE: loop exit
PB: predicated region body
PF: predicated region fallthrough
CT: control target
= control target key end

     0   :  { %s1222_s6 = smov 0   ;;  %s1395_s0 = inlined_call_operand.vmem [shape: bf16[2,24,96], index: 0, kind: input, shape index: {}]   ;;  %s1396_s1 = inlined_call_operand.vmem [shape: bf16[2,24,32], index: 1, kind: output, shape index: {}]  }
   0x1 LB: > { %s958_s7 = sadd.s32 4294967295, %s1196_s6   ;;  %p962_p0 = scmp.ge.s32.totalorder %s1196_s6, 1  ;;  %s1196_s6 = sphi %s1222_s6, %s11_s6  }
   0x2   : > { %p87_p1 = scmp.lt.s32.totalorder %s1196_s6, 3 }
   0x4   : > { %p88_p2 = pnand %p962_p0, %p87_p1 }
   0x5   : > { %p107_p3 = scmp.lt.s32.totalorder (!%p88_p2), %s958_s7, 1  ;;  %vm136_vm0 = vcmask (!%p88_p2), 64512   ;;  %s1198_s12 = smov (!%p88_p2), 96   ;;  %v121_v6 = vlaneseq (!%p88_p2)  ;;  %vm205_vm2 = vcmask (!%p88_p2), 195584   ;;  %vm252_vm3 = vcmask (!%p88_p2), 1043456  }
   0x6   : > { %91 = sbr.rel (%p88_p2) target bundleno = 2695 (0xa87), region = 24  ;;  %s1199_s13 = smov (!%p88_p2), 64   ;;  %vm317_vm4 = vcmask (!%p88_p2), 60416   ;;  %vm511_vm5 = vcmask (!%p88_p2), 126016   ;;  %vm705_vm6 = vcmask (!%p88_p2), 191616   ;;  %vm899_vm7 = vcmask (!%p88_p2), 257216  }
   0x7   : > { %v1252_v7 = vand.u32 (!%p88_p2), 127, %v121_v6  ;;  %s1200_s14 = smov (!%p88_p2), 88   ;;  %s1201_s15 = smov (!%p88_p2), 120  }
   0x8   : > { %s1202_s19 = smov (!%p88_p2), 56   ;;  %s1203_s20 = smov (!%p88_p2), 80  }
   0x9   : > { %vm123_vm1 = vcmp.lt.s32.totalorder (!%p88_p2), %v1252_v7, 17  ;;  %s1204_s21 = smov (!%p88_p2), 112   ;;  %s1205_s22 = smov (!%p88_p2), 48  }
   0xa   : > { %s1206_s23 = smov (!%p88_p2), 72   ;;  %s1207_s24 = smov (!%p88_p2), 104  }
   0xb   : > { %s1208_s25 = smov (!%p88_p2), 40   ;;  %s1209_s26 = smov (!%p88_p2), 8  }
   0xc   : > { %s1210_s27 = smov (!%p88_p2), 16   ;;  %s1211_s28 = smov (!%p88_p2), 24  }
   0xd   : > { %s1398_s7 = smov (!%p107_p3, %s958_s7), 1 }
   0xe   : > { %s1117_s8 = smul.u32 12, %s1398_s7 }
  0x10   : > { %s111_s11 = scalar_lea.vmem %s1395_s0, %s1117_s8  ;;  %s1288_s18 = scalar_lea.vmem %s1396_s1, %s1117_s8 }
  0x11   : > { %v1238_v0 = vld [vmem:[%s111_s11] sm:$0xff]   ;;  %v1241_v1 = vld [vmem:[%s111_s11 + $0x8] ss:$0 sps:$4 sm:$0xff]  }
  0x12   : > { %132 = vrot.lane.b32.xlu0 %v1238_v0, %s1198_s12  ;;  %1045 = vmatprep.mubr.msk.bf16.mxu0 %vm136_vm0, %v1238_v0 }
  0x16   : > { %134 = vrot.lane.b32.xlu0 %v1241_v1, %s1198_s12 }
  0x84   : > { %v133_v2 = vpop.permute.xlu0 %132 }
  0x85   : > { %1105 = vmatprep.subr.msk.bf16.mxu0 %vm136_vm0, %v133_v2  ;;  %v144_v3 = vsel %vm136_vm0, %v133_v2, 0 }
  0x86   : > { %1042 = vmatpush3.bf16.xpose.msra.mxu0 %v144_v3 }
  0x88   : > { %v135_v4 = vpop.permute.xlu0 %134 }
  0x89   : > { %1106 = vmatprep.subr.msk.bf16.mxu0 %vm136_vm0, %v135_v4  ;;  %v147_v5 = vsel %vm136_vm0, %v135_v4, 0 }
  0x8e   : > { %1044 = vmatpush3.bf16.xpose.msra.mxu0 %v147_v5 }
  0x95   : > { %1046 = vmatmul.mubr.msk.bf16.vlgmr.msra.gmra.mrb[0].mxu0 %vm136_vm0, %v1241_v1 }
 0x168   : > { %v1047_v8 = vpop.f32.mrb[0].mxu0 }
 0x169   : > { %v199_v9 = vmul.f32 0.35355338, %v1047_v8  ;;  %v183_v10 = vpop.f32.mrb[1].mxu0 }
 0x16a   : > { %v197_v11 = vmul.f32 0.35355338, %v183_v10  ;;  %v1048_v12 = vpop.f32.mrb[2].mxu0 }
 0x16b   : > { %v186_v13 = vpop.f32.mrb[3].mxu0  ;;  %v204_v14 = vsel %vm123_vm1, %v199_v9, -1e+30 }
 0x16c   : > { %v198_v15 = vmul.f32 0.35355338, %v186_v13  ;;  %v212_v16 = vsel %vm205_vm2, %v204_v14, -inf  ;;  %v202_v17 = vsel %vm123_vm1, %v197_v11, -1e+30 }
 0x16d   : > { %213 = vmax.xlane.f32.xlu0 %v212_v16  ;;  %v206_v18 = vsel %vm205_vm2, %v202_v17, -inf }
 0x16e   : > { %207 = vmax.xlane.f32.xlu1 %v206_v18  ;;  %v203_v19 = vsel %vm123_vm1, %v198_v15, -1e+30 }
 0x16f   : > { %v209_v20 = vsel %vm205_vm2, %v203_v19, -inf }
 0x172   : > { %210 = vmax.xlane.f32.xlu1 %v209_v20 }
 0x183   : > { %241 = vrot.lane.b32.xlu1 %v1238_v0, %s1199_s13  ;;  %325 = vrot.lane.b32.xlu0 %v1238_v0, %s1200_s14 }
 0x1fa   : > { %v214_v21 = vpop.xlane.xlu0 %213 }
 0x1fb   : > { %v217_v22 = vsub.f32 %v204_v14, %v214_v21  ;;  %v208_v23 = vpop.xlane.xlu1 %207 }
 0x1fc   : > { %v215_v24 = vsub.f32 %v202_v17, %v208_v23 }
 0x1fd   : > { %v222_v25 = vmul.f32 1.442695, %v217_v22 }
 0x1fe   : > { %v218_v26 = vmul.f32 1.442695, %v215_v24  ;;  %v326_v41 = vpop.permute.xlu0 %325 }
 0x1ff   : > { %1142 = vpow2.f32 %v222_v25  ;;  %v211_v27 = vpop.xlane.xlu1 %210  ;;  %v336_v51 = vsel %vm136_vm0, %v326_v41, 0 }
 0x200   : > { %v216_v28 = vsub.f32 %v203_v19, %v211_v27  ;;  %1144 = vpow2.f32 %v218_v26 }
 0x202   : > { %v220_v29 = vmul.f32 1.442695, %v216_v28 }
 0x203   : > { %v242_v30 = vpop.permute.xlu1 %241 }
 0x204   : > { %1049 = vmatprep.subr.bf16.mxu1 %v242_v30  ;;  %1146 = vpow2.f32 %v220_v29 }
 0x205   : > { %1050 = vmatpush3.bf16.msra.mxu1 %v242_v30 }
 0x209   : > { %v1143_v31 = vpop.eup %1142 }
 0x20a   : > { %v230_v32 = vsel %vm205_vm2, %v1143_v31, 0.0  ;;  %v1145_v33 = vpop.eup %1144 }
 0x20b   : > { %231 = vadd.xlane.f32.xlu1 %v230_v32  ;;  %v224_v34 = vsel %vm205_vm2, %v1145_v33, 0.0 }
 0x20e   : > { %v1147_v35 = vpop.eup %1146 }
 0x20f   : > { %225 = vadd.xlane.f32.xlu1 %v224_v34  ;;  %v227_v36 = vsel %vm205_vm2, %v1147_v35, 0.0 }
 0x213   : > { %228 = vadd.xlane.f32.xlu1 %v227_v36 }
 0x224   : > { %243 = vrot.lane.b32.xlu1 %v1241_v1, %s1199_s13 }
 0x228   : > { %327 = vrot.lane.b32.xlu1 %v1241_v1, %s1200_s14 }
 0x22c   : > { %321 = vrot.lane.b32.xlu1 %v1238_v0, %s1201_s15 }
 0x230   : > { %323 = vrot.lane.b32.xlu1 %v1241_v1, %s1201_s15 }
 0x298   : > { %v232_v37 = vpop.xlane.xlu1 %231 }
 0x299   : > { %1148 = vrcp.f32 %v232_v37 }
 0x29c   : > { %v226_v38 = vpop.xlane.xlu1 %225 }
 0x29d   : > { %1150 = vrcp.f32 %v226_v38 }
 0x2a0   : > { %v229_v39 = vpop.xlane.xlu1 %228 }
 0x2a1   : > { %1152 = vrcp.f32 %v229_v39 }
 0x2a3   : > { %v1149_v43 = vpop.eup %1148 }
 0x2a4   : > { %v244_v40 = vpop.permute.xlu1 %243  ;;  %v238_v47 = vmul.f32 %v1149_v43, %v1143_v31 }
 0x2a5   : > { %1107 = vmatprep.subr.msk.bf16.mxu1 %vm252_vm3, %v244_v40  ;;  %v254_v42 = vsel %vm252_vm3, %v244_v40, 0 }
 0x2a6   : > { %1052 = vmatpush3.bf16.msra.mxu1 %v254_v42  ;;  %v240_v52 = vpack.c.bf16 %v238_v47, %v238_v47 }
 0x2a7   : > { %1108 = vmatprep.subr.msk.bf16.mxu1 %vm136_vm0, %v326_v41  ;;  %v1151_v44 = vpop.eup %1150 }
 0x2a8   : > { %v328_v45 = vpop.permute.xlu1 %327  ;;  %v236_v48 = vmul.f32 %v1151_v44, %v1145_v33 }
 0x2a9   : > { %v339_v54 = vsel %vm136_vm0, %v328_v45, 0 }
 0x2ab   : > { %v1153_v46 = vpop.eup %1152 }
 0x2ac   : > { %v237_v49 = vmul.f32 %v1153_v46, %v1147_v35  ;;  %v322_v53 = vpop.permute.xlu1 %321 }
 0x2ae   : > { %v239_v50 = vpack.c.bf16 %v237_v49, %v236_v48 }
 0x2b0   : > { %1053 = vmatprep.mubr.msk.bf16.mxu1 %vm205_vm2, %v239_v50  ;;  %v324_v55 = vpop.permute.xlu1 %323 }
 0x2b1   : > { %1054 = vmatmul.mubr.msk.bf16.vlgmr.msra.gmra.mrb[0].mxu1 %vm205_vm2, %v240_v52 }
 0x2b2   : > { %1058 = vmatpush3.bf16.xpose.msra.mxu1 %v336_v51  ;;  %1061 = vmatprep.mubr.msk.bf16.mxu1 %vm136_vm0, %v322_v53 }
 0x2b3   : > { %1109 = vmatprep.subr.msk.bf16.mxu1 %vm136_vm0, %v328_v45 }
 0x2ba   : > { %1060 = vmatpush3.bf16.xpose.msra.mxu1 %v339_v54 }
 0x2c1   : > { %1062 = vmatmul.mubr.msk.bf16.vlgmr.msra.gmra.mrb[4].mxu1 %vm136_vm0, %v324_v55 }
 0x384   : > { %v1055_v56 = vpop.f32.mrb[0].mxu1 }
 0x385   : > { %v999_v57 = vpack.c.bf16 %v1055_v56, %v1055_v56  ;;  %v290_v58 = vpop.f32.mrb[1].mxu1 }
 0x386   : > { %v997_v59 = vpack.c.bf16 %v290_v58, %v290_v58  ;;  %v1056_v60 = vpop.f32.mrb[2].mxu1 }
 0x387   : > { %320 = vst.msk [vmem:[%s1288_s18 + $0x8] sm:$0xf] %vm317_vm4, %v999_v57  ;;  %v293_v61 = vpop.f32.mrb[3].mxu1 }
 0x388   : > { %318 = vst.msk [vmem:[%s1288_s18] sm:$0xf] %vm317_vm4, %v997_v59  ;;  %v998_v62 = vpack.c.bf16 %v293_v61, %v293_v61 }
 0x38a   : > { %319 = vst.msk [vmem:[%s1288_s18 + $0x4] sm:$0xf] %vm317_vm4, %v998_v62 }
 0x394   : > { %v1063_v63 = vpop.f32.mrb[4].mxu1 }
 0x395   : > { %v375_v2 = vpop.f32.mrb[5].mxu1  ;;  %v391_v3 = vmul.f32 0.35355338, %v1063_v63 }
 0x396   : > { %v389_v4 = vmul.f32 0.35355338, %v375_v2  ;;  %v1064_v5 = vpop.f32.mrb[6].mxu1 }
 0x397   : > { %v378_v6 = vpop.f32.mrb[7].mxu1  ;;  %v394_v12 = vsel %vm123_vm1, %v391_v3, -1e+30 }
 0x398   : > { %v390_v8 = vmul.f32 0.35355338, %v378_v6  ;;  %v392_v9 = vsel %vm123_vm1, %v389_v4, -1e+30  ;;  %v401_v14 = vsel %vm205_vm2, %v394_v12, -inf }
 0x399   : > { %v395_v10 = vsel %vm205_vm2, %v392_v9, -inf }
 0x39a   : > { %396 = vmax.xlane.f32.xlu1 %v395_v10  ;;  %v393_v11 = vsel %vm123_vm1, %v390_v8, -1e+30 }
 0x39b   : > { %v398_v13 = vsel %vm205_vm2, %v393_v11, -inf }
 0x39c   : > { %399 = vmax.xlane.f32.xlu0 %v398_v13 }
 0x39e   : > { %402 = vmax.xlane.f32.xlu1 %v401_v14 }
 0x3af   : > { %430 = vrot.lane.b32.xlu1 %v1238_v0, %s1202_s19 }
 0x427   : > { %v397_v15 = vpop.xlane.xlu1 %396 }
 0x428   : > { %v404_v17 = vsub.f32 %v392_v9, %v397_v15 }
 0x429   : > { %v400_v16 = vpop.xlane.xlu0 %399 }
 0x42a   : > { %v405_v18 = vsub.f32 %v393_v11, %v400_v16  ;;  %v407_v22 = vmul.f32 1.442695, %v404_v17 }
 0x42b   : > { %v403_v19 = vpop.xlane.xlu1 %402 }
 0x42c   : > { %v409_v20 = vmul.f32 1.442695, %v405_v18  ;;  %v406_v21 = vsub.f32 %v394_v12, %v403_v19 }
 0x42e   : > { %1154 = vpow2.f32 %v409_v20  ;;  %v411_v23 = vmul.f32 1.442695, %v406_v21 }
 0x42f   : > { %v431_v24 = vpop.permute.xlu1 %430 }
 0x430   : > { %1156 = vpow2.f32 %v411_v23  ;;  %1065 = vmatprep.subr.bf16.mxu0 %v431_v24 }
 0x431   : > { %1066 = vmatpush3.bf16.msra.mxu0 %v431_v24  ;;  %1158 = vpow2.f32 %v407_v22 }
 0x438   : > { %v1155_v25 = vpop.eup %1154 }
 0x439   : > { %v416_v26 = vsel %vm205_vm2, %v1155_v25, 0.0 }
 0x43a   : > { %v1157_v27 = vpop.eup %1156  ;;  %417 = vadd.xlane.f32.xlu1 %v416_v26 }
 0x43b   : > { %v419_v28 = vsel %vm205_vm2, %v1157_v27, 0.0  ;;  %v1159_v29 = vpop.eup %1158 }
 0x43c   : > { %420 = vadd.xlane.f32.xlu0 %v419_v28  ;;  %v413_v30 = vsel %vm205_vm2, %v1159_v29, 0.0 }
 0x440   : > { %414 = vadd.xlane.f32.xlu0 %v413_v30 }
 0x44b   : > { %519 = vrot.lane.b32.xlu1 %v1238_v0, %s1203_s20 }
 0x44f   : > { %521 = vrot.lane.b32.xlu1 %v1241_v1, %s1203_s20 }
 0x453   : > { %517 = vrot.lane.b32.xlu1 %v1241_v1, %s1204_s21 }
 0x456   : > { %432 = vrot.lane.b32.xlu0 %v1241_v1, %s1202_s19 }
 0x45a   : > { %515 = vrot.lane.b32.xlu0 %v1238_v0, %s1204_s21 }
 0x4c7   : > { %v418_v31 = vpop.xlane.xlu1 %417 }
 0x4c9   : > { %v421_v32 = vpop.xlane.xlu0 %420 }
 0x4ca   : > { %1160 = vrcp.f32 %v421_v32 }
 0x4cb   : > { %1162 = vrcp.f32 %v418_v31  ;;  %v520_v35 = vpop.permute.xlu1 %519 }
 0x4cc   : > { %v530_v44 = vsel %vm136_vm0, %v520_v35, 0 }
 0x4cd   : > { %v415_v33 = vpop.xlane.xlu0 %414 }
 0x4ce   : > { %1164 = vrcp.f32 %v415_v33 }
 0x4cf   : > { %v522_v47 = vpop.permute.xlu1 %521 }
 0x4d0   : > { %v533_v48 = vsel %vm136_vm0, %v522_v47, 0 }
 0x4d1   : > { %v433_v34 = vpop.permute.xlu0 %432 }
 0x4d2   : > { %v442_v36 = vsel %vm252_vm3, %v433_v34, 0  ;;  %1110 = vmatprep.subr.msk.bf16.mxu0 %vm252_vm3, %v433_v34 }
 0x4d3   : > { %1068 = vmatpush3.bf16.msra.mxu0 %v442_v36  ;;  %v518_v49 = vpop.permute.xlu1 %517 }
 0x4d4   : > { %1111 = vmatprep.subr.msk.bf16.mxu0 %vm136_vm0, %v520_v35  ;;  %v1161_v37 = vpop.eup %1160 }
 0x4d5   : > { %v1163_v38 = vpop.eup %1162  ;;  %v427_v40 = vmul.f32 %v1161_v37, %v1157_v27  ;;  %v516_v46 = vpop.permute.xlu0 %515 }
 0x4d6   : > { %v426_v42 = vmul.f32 %v1163_v38, %v1155_v25 }
 0x4d7   : > { %v429_v45 = vpack.c.bf16 %v427_v40, %v427_v40 }
 0x4d8   : > { %v1165_v39 = vpop.eup %1164 }
 0x4d9   : > { %v425_v41 = vmul.f32 %v1165_v39, %v1159_v29 }
 0x4db   : > { %v428_v43 = vpack.c.bf16 %v426_v42, %v425_v41 }
 0x4dd   : > { %1069 = vmatprep.mubr.msk.bf16.mxu0 %vm205_vm2, %v428_v43 }
 0x4de   : > { %1070 = vmatmul.mubr.msk.bf16.vlgmr.msra.gmra.mrb[4].mxu0 %vm205_vm2, %v429_v45 }
 0x4df   : > { %1074 = vmatpush3.bf16.xpose.msra.mxu0 %v530_v44  ;;  %1077 = vmatprep.mubr.msk.bf16.mxu0 %vm136_vm0, %v516_v46 }
 0x4e0   : > { %1112 = vmatprep.subr.msk.bf16.mxu0 %vm136_vm0, %v522_v47 }
 0x4e7   : > { %1076 = vmatpush3.bf16.xpose.msra.mxu0 %v533_v48 }
 0x4ee   : > { %1078 = vmatmul.mubr.msk.bf16.vlgmr.msra.gmra.mrb[8].mxu0 %vm136_vm0, %v518_v49 }
 0x5b1   : > { %v1323_v50 = vpop.f32.mrb[4].mxu0 }
 0x5b2   : > { %v1325_v51 = vpop.f32.mrb[5].mxu0 }
 0x5b3   : > { %v1072_v52 = vpop.f32.mrb[6].mxu0 }
 0x5b4   : > { %v1327_v53 = vpop.f32.mrb[7].mxu0 }
 0x5c1   : > { %v1079_v54 = vpop.f32.mrb[8].mxu0 }
 0x5c2   : > { %v569_v55 = vpop.f32.mrb[9].mxu0  ;;  %v585_v56 = vmul.f32 0.35355338, %v1079_v54 }
 0x5c3   : > { %v583_v57 = vmul.f32 0.35355338, %v569_v55  ;;  %v1080_v58 = vpop.f32.mrb[10].mxu0 }
 0x5c4   : > { %v572_v59 = vpop.f32.mrb[11].mxu0  ;;  %v588_v2 = vsel %vm123_vm1, %v585_v56, -1e+30 }
 0x5c5   : > { %v584_v60 = vmul.f32 0.35355338, %v572_v59  ;;  %v586_v61 = vsel %vm123_vm1, %v583_v57, -1e+30  ;;  %v595_v4 = vsel %vm205_vm2, %v588_v2, -inf }
 0x5c6   : > { %v589_v62 = vsel %vm205_vm2, %v586_v61, -inf }
 0x5c7   : > { %590 = vmax.xlane.f32.xlu0 %v589_v62  ;;  %v587_v63 = vsel %vm123_vm1, %v584_v60, -1e+30 }
 0x5c8   : > { %v592_v3 = vsel %vm205_vm2, %v587_v63, -inf }
 0x5c9   : > { %593 = vmax.xlane.f32.xlu1 %v592_v3 }
 0x5cb   : > { %596 = vmax.xlane.f32.xlu0 %v595_v4 }
 0x5da   : > { %624 = vrot.lane.b32.xlu1 %v1238_v0, %s1205_s22 }
 0x654   : > { %v591_v5 = vpop.xlane.xlu0 %590 }
 0x655   : > { %v598_v8 = vsub.f32 %v586_v61, %v591_v5 }
 0x656   : > { %v594_v6 = vpop.xlane.xlu1 %593 }
 0x657   : > { %v599_v9 = vsub.f32 %v587_v63, %v594_v6  ;;  %v601_v14 = vmul.f32 1.442695, %v598_v8 }
 0x658   : > { %v597_v10 = vpop.xlane.xlu0 %596 }
 0x659   : > { %v603_v11 = vmul.f32 1.442695, %v599_v9  ;;  %v600_v12 = vsub.f32 %v588_v2, %v597_v10 }
 0x65a   : > { %v625_v13 = vpop.permute.xlu1 %624 }
 0x65b   : > { %1166 = vpow2.f32 %v603_v11  ;;  %v605_v15 = vmul.f32 1.442695, %v600_v12  ;;  %1081 = vmatprep.subr.bf16.mxu1 %v625_v13 }
 0x65c   : > { %1082 = vmatpush3.bf16.msra.mxu1 %v625_v13 }
 0x65d   : > { %1168 = vpow2.f32 %v605_v15  ;;  %v1001_v15 = vpack.c.bf16 %v1327_v53, %v1327_v53 }
 0x65e   : > { %1170 = vpow2.f32 %v601_v14  ;;  %v1000_v14 = vpack.c.bf16 %v1325_v51, %v1325_v51 }
 0x665   : > { %v1167_v16 = vpop.eup %1166 }
 0x666   : > { %v610_v17 = vsel %vm205_vm2, %v1167_v16, 0.0 }
 0x667   : > { %v1169_v18 = vpop.eup %1168  ;;  %611 = vadd.xlane.f32.xlu1 %v610_v17  ;;  %v1002_v17 = vpack.c.bf16 %v1323_v50, %v1323_v50 }
 0x668   : > { %v613_v19 = vsel %vm205_vm2, %v1169_v18, 0.0  ;;  %v1171_v20 = vpop.eup %1170 }
 0x669   : > { %614 = vadd.xlane.f32.xlu0 %v613_v19  ;;  %v607_v21 = vsel %vm205_vm2, %v1171_v20, 0.0 }
 0x66d   : > { %608 = vadd.xlane.f32.xlu0 %v607_v21 }
 0x678   : > { %713 = vrot.lane.b32.xlu1 %v1238_v0, %s1206_s23 }
 0x67c   : > { %715 = vrot.lane.b32.xlu1 %v1241_v1, %s1206_s23 }
 0x680   : > { %711 = vrot.lane.b32.xlu1 %v1241_v1, %s1207_s24 }
 0x683   : > { %626 = vrot.lane.b32.xlu0 %v1241_v1, %s1205_s22 }
 0x687   : > { %709 = vrot.lane.b32.xlu0 %v1238_v0, %s1207_s24 }
 0x6f4   : > { %v612_v22 = vpop.xlane.xlu1 %611 }
 0x6f6   : > { %v615_v23 = vpop.xlane.xlu0 %614 }
 0x6f7   : > { %1172 = vrcp.f32 %v615_v23 }
 0x6f8   : > { %1174 = vrcp.f32 %v612_v22  ;;  %v714_v26 = vpop.permute.xlu1 %713 }
 0x6f9   : > { %v724_v35 = vsel %vm136_vm0, %v714_v26, 0 }
 0x6fa   : > { %v609_v24 = vpop.xlane.xlu0 %608 }
 0x6fb   : > { %1176 = vrcp.f32 %v609_v24 }
 0x6fc   : > { %v716_v38 = vpop.permute.xlu1 %715 }
 0x6fd   : > { %v727_v39 = vsel %vm136_vm0, %v716_v38, 0 }
 0x6fe   : > { %v627_v25 = vpop.permute.xlu0 %626 }
 0x6ff   : > { %v636_v27 = vsel %vm252_vm3, %v627_v25, 0  ;;  %1113 = vmatprep.subr.msk.bf16.mxu1 %vm252_vm3, %v627_v25 }
 0x700   : > { %1084 = vmatpush3.bf16.msra.mxu1 %v636_v27  ;;  %v712_v40 = vpop.permute.xlu1 %711 }
 0x701   : > { %1114 = vmatprep.subr.msk.bf16.mxu1 %vm136_vm0, %v714_v26  ;;  %v1173_v28 = vpop.eup %1172 }
 0x702   : > { %v1175_v29 = vpop.eup %1174  ;;  %v621_v31 = vmul.f32 %v1173_v28, %v1169_v18  ;;  %v710_v37 = vpop.permute.xlu0 %709 }
 0x703   : > { %v620_v33 = vmul.f32 %v1175_v29, %v1167_v16 }
 0x704   : > { %v623_v36 = vpack.c.bf16 %v621_v31, %v621_v31 }
 0x705   : > { %v1177_v30 = vpop.eup %1176 }
 0x706   : > { %v619_v32 = vmul.f32 %v1177_v30, %v1171_v20 }
 0x708   : > { %v622_v34 = vpack.c.bf16 %v620_v33, %v619_v32 }
 0x70a   : > { %1085 = vmatprep.mubr.msk.bf16.mxu1 %vm205_vm2, %v622_v34 }
 0x70b   : > { %1086 = vmatmul.mubr.msk.bf16.vlgmr.msra.gmra.mrb[8].mxu1 %vm205_vm2, %v623_v36 }
 0x70c   : > { %1090 = vmatpush3.bf16.xpose.msra.mxu1 %v724_v35  ;;  %1093 = vmatprep.mubr.msk.bf16.mxu1 %vm136_vm0, %v710_v37 }
 0x70d   : > { %1115 = vmatprep.subr.msk.bf16.mxu1 %vm136_vm0, %v716_v38 }
 0x714   : > { %1092 = vmatpush3.bf16.xpose.msra.mxu1 %v727_v39 }
 0x71b   : > { %1094 = vmatmul.mubr.msk.bf16.vlgmr.msra.gmra.mrb[12].mxu1 %vm136_vm0, %v712_v40 }
 0x7de   : > { %v1087_v41 = vpop.f32.mrb[8].mxu1 }
 0x7df   : > { %v672_v42 = vpop.f32.mrb[9].mxu1  ;;  %v1005_v18 = vpack.c.bf16 %v1087_v41, %v1087_v41 }
 0x7e0   : > { %v1088_v43 = vpop.f32.mrb[10].mxu1  ;;  %v1003_v16 = vpack.c.bf16 %v672_v42, %v672_v42 }
 0x7e1   : > { %v675_v44 = vpop.f32.mrb[11].mxu1 }
 0x7ee   : > { %v1095_v45 = vpop.f32.mrb[12].mxu1 }
 0x7ef   : > { %v763_v46 = vpop.f32.mrb[13].mxu1  ;;  %v779_v47 = vmul.f32 0.35355338, %v1095_v45 }
 0x7f0   : > { %v777_v48 = vmul.f32 0.35355338, %v763_v46  ;;  %v1096_v49 = vpop.f32.mrb[14].mxu1 }
 0x7f1   : > { %v766_v52 = vpop.f32.mrb[15].mxu1  ;;  %v782_v58 = vsel %vm123_vm1, %v779_v47, -1e+30 }
 0x7f2   : > { %v778_v54 = vmul.f32 0.35355338, %v766_v52  ;;  %v780_v55 = vsel %vm123_vm1, %v777_v48, -1e+30  ;;  %v789_v60 = vsel %vm205_vm2, %v782_v58, -inf }
 0x7f3   : > { %v783_v56 = vsel %vm205_vm2, %v780_v55, -inf }
 0x7f4   : > { %784 = vmax.xlane.f32.xlu0 %v783_v56  ;;  %v781_v57 = vsel %vm123_vm1, %v778_v54, -1e+30 }
 0x7f5   : > { %v786_v59 = vsel %vm205_vm2, %v781_v57, -inf }
 0x7f6   : > { %787 = vmax.xlane.f32.xlu1 %v786_v59 }
 0x7f8   : > { %790 = vmax.xlane.f32.xlu0 %v789_v60 }
 0x881   : > { %v785_v61 = vpop.xlane.xlu0 %784 }
 0x882   : > { %v792_v63 = vsub.f32 %v780_v55, %v785_v61 }
 0x883   : > { %v788_v62 = vpop.xlane.xlu1 %787 }
 0x884   : > { %v793_v2 = vsub.f32 %v781_v57, %v788_v62  ;;  %v795_v6 = vmul.f32 1.442695, %v792_v63 }
 0x885   : > { %v791_v3 = vpop.xlane.xlu0 %790 }
 0x886   : > { %v797_v4 = vmul.f32 1.442695, %v793_v2  ;;  %v794_v5 = vsub.f32 %v782_v58, %v791_v3 }
 0x888   : > { %1178 = vpow2.f32 %v797_v4  ;;  %v799_v8 = vmul.f32 1.442695, %v794_v5 }
 0x88a   : > { %1180 = vpow2.f32 %v799_v8 }
 0x88b   : > { %1182 = vpow2.f32 %v795_v6 }
 0x892   : > { %v1179_v7 = vpop.eup %1178 }
 0x893   : > { %v804_v9 = vsel %vm205_vm2, %v1179_v7, 0.0 }
 0x894   : > { %v1181_v10 = vpop.eup %1180  ;;  %805 = vadd.xlane.f32.xlu1 %v804_v9 }
 0x895   : > { %v807_v11 = vsel %vm205_vm2, %v1181_v10, 0.0  ;;  %v1183_v12 = vpop.eup %1182 }
 0x896   : > { %808 = vadd.xlane.f32.xlu0 %v807_v11  ;;  %v801_v13 = vsel %vm205_vm2, %v1183_v12, 0.0 }
 0x89a   : > { %802 = vadd.xlane.f32.xlu0 %v801_v13 }
 0x8a5   : > { %818 = vrot.lane.b32.xlu1 %v1238_v0, %s1208_s25  ;;  %v1004_v0 = vpack.c.bf16 %v675_v44, %v675_v44 }
 0x8a9   : > { %502 = vrot.lane.b32.xlu1 %v1000_v14, %s1209_s26 }
 0x8ad   : > { %504 = vrot.lane.b32.xlu1 %v1001_v15, %s1209_s26 }
 0x8b0   : > { %820 = vrot.lane.b32.xlu0 %v1241_v1, %s1208_s25 }
 0x8b1   : > { %696 = vrot.lane.b32.xlu1 %v1003_v16, %s1210_s27 }
 0x8b4   : > { %506 = vrot.lane.b32.xlu0 %v1002_v17, %s1209_s26 }
 0x8b5   : > { %700 = vrot.lane.b32.xlu1 %v1005_v18, %s1210_s27 }
 0x8b8   : > { %698 = vrot.lane.b32.xlu0 %v1004_v0, %s1210_s27 }
 0x921   : > { %v806_v51 = vpop.xlane.xlu1 %805 }
 0x923   : > { %v809_v19 = vpop.xlane.xlu0 %808 }
 0x924   : > { %1184 = vrcp.f32 %v809_v19 }
 0x925   : > { %v819_v53 = vpop.permute.xlu1 %818  ;;  %1186 = vrcp.f32 %v806_v51 }
 0x926   : > { %1097 = vmatprep.subr.bf16.mxu0 %v819_v53 }
 0x927   : > { %v803_v20 = vpop.xlane.xlu0 %802  ;;  %1098 = vmatpush3.bf16.msra.mxu0 %v819_v53 }
 0x928   : > { %1188 = vrcp.f32 %v803_v20 }
 0x929   : > { %v503_v1 = vpop.permute.xlu1 %502 }
 0x92a   : > { %512 = vst.msk [vmem:[%s1288_s18] sm:$0xf] %vm511_vm5, %v503_v1 }
 0x92b   : > { %v821_v50 = vpop.permute.xlu0 %820 }
 0x92c   : > { %v830_v21 = vsel %vm252_vm3, %v821_v50, 0  ;;  %1116 = vmatprep.subr.msk.bf16.mxu0 %vm252_vm3, %v821_v50 }
 0x92d   : > { %v505_v22 = vpop.permute.xlu1 %504  ;;  %1100 = vmatpush3.bf16.msra.mxu0 %v830_v21 }
 0x92e   : > { %513 = vst.msk [vmem:[%s1288_s18 + $0x4] sm:$0xf] %vm511_vm5, %v505_v22  ;;  %v1185_v23 = vpop.eup %1184 }
 0x92f   : > { %v507_v24 = vpop.permute.xlu0 %506  ;;  %v1187_v25 = vpop.eup %1186  ;;  %v815_v28 = vmul.f32 %v1185_v23, %v1181_v10 }
 0x930   : > { %514 = vst.msk [vmem:[%s1288_s18 + $0x8] sm:$0xf] %vm511_vm5, %v507_v24  ;;  %v814_v31 = vmul.f32 %v1187_v25, %v1179_v7 }
 0x931   : > { %v697_v26 = vpop.permute.xlu1 %696  ;;  %v817_v34 = vpack.c.bf16 %v815_v28, %v815_v28 }
 0x932   : > { %v1189_v27 = vpop.eup %1188  ;;  %706 = vst.msk [vmem:[%s1288_s18] sm:$0xf] %vm705_vm6, %v697_v26 }
 0x933   : > { %v699_v29 = vpop.permute.xlu0 %698  ;;  %v813_v30 = vmul.f32 %v1189_v27, %v1183_v12 }
 0x934   : > { %707 = vst.msk [vmem:[%s1288_s18 + $0x4] sm:$0xf] %vm705_vm6, %v699_v29 }
 0x935   : > { %v701_v32 = vpop.permute.xlu1 %700  ;;  %v816_v33 = vpack.c.bf16 %v814_v31, %v813_v30 }
 0x936   : > { %708 = vst.msk [vmem:[%s1288_s18 + $0x8] sm:$0xf] %vm705_vm6, %v701_v32 }
 0x937   : > { %1101 = vmatprep.mubr.msk.bf16.mxu0 %vm205_vm2, %v816_v33 }
 0x938   : > { %1102 = vmatmul.mubr.msk.bf16.vlgmr.msra.gmra.mrb[12].mxu0 %vm205_vm2, %v817_v34 }
 0xa0b   : > { %v1103_v35 = vpop.f32.mrb[12].mxu0 }
 0xa0c   : > { %v866_v36 = vpop.f32.mrb[13].mxu0  ;;  %v1008_v41 = vpack.c.bf16 %v1103_v35, %v1103_v35 }
 0xa0d   : > { %v1006_v37 = vpack.c.bf16 %v866_v36, %v866_v36  ;;  %v1104_v38 = vpop.f32.mrb[14].mxu0 }
 0xa0e   : > { %v869_v39 = vpop.f32.mrb[15].mxu0 }
 0xa0f   : > { %v1007_v40 = vpack.c.bf16 %v869_v39, %v869_v39  ;;  %890 = vrot.lane.b32.xlu0 %v1006_v37, %s1211_s28 }
 0xa11   : > { %892 = vrot.lane.b32.xlu1 %v1007_v40, %s1211_s28 }
 0xa13   : > { %894 = vrot.lane.b32.xlu0 %v1008_v41, %s1211_s28 }
 0xa81   : > { %v891_v42 = vpop.permute.xlu0 %890 }
 0xa82   : > { %900 = vst.msk [vmem:[%s1288_s18] sm:$0xf] %vm899_vm7, %v891_v42 }
 0xa83   : > { %v893_v43 = vpop.permute.xlu1 %892 }
 0xa84   : > { %901 = vst.msk [vmem:[%s1288_s18 + $0x4] sm:$0xf] %vm899_vm7, %v893_v43 }
 0xa85   : > { %v895_v44 = vpop.permute.xlu0 %894 }
 0xa86   : > { %902 = vst.msk [vmem:[%s1288_s18 + $0x8] sm:$0xf] %vm899_vm7, %v895_v44 }
 0xa87 PF: > { %s11_s6 = sadd.s32 1, %s1196_s6  }
 0xa88   : > { %p8_p4 = scmp.ge.s32.totalorder %s11_s6, 4  }
 0xa8a   :  { %10 = sbr.rel (!%p8_p4) target bundleno = 1 (0x1), region = 54 }

// kernel: vit_forward.17
= control target key start
LH: loop header
LB: loop body
LE: loop exit
PB: predicated region body
PF: predicated region fallthrough
CT: control target
= control target key end

     0   :  { %vm22_vm0 = vcmask 261120   ;;  %v372_v0 = vmov 0.0   ;;  %vm373_vm1 = vmmov 0   ;;  %v204_v12 = vlaneseq  ;;  %s483_s1 = inlined_call_operand.vmem [shape: bf16[128,32], index: 1, kind: input, shape index: {}]   ;;  %s484_s0 = inlined_call_operand.vmem [shape: bf16[48,128], index: 0, kind: input, shape index: {}]   ;;  %s485_s2 = inlined_call_operand.vmem [shape: bf16[1,32], index: 2, kind: input, shape index: {}]   ;;  %s486_s3 = inlined_call_operand.vmem [shape: bf16[48,32], index: 3, kind: input, shape index: {}, may-alias: {3,4}]   ;;  %s487_s4 = inlined_call_operand.vmem [shape: bf16[48,32], index: 4, kind: output, shape index: {}, may-alias: {3,4}]  }
   0x1   :  { %343 = vmatprep.subr.bf16.mxu1 %v372_v0  ;;  %v361_v1 = vld [vmem:[%s483_s1] sm:$0xff]   ;;  %315 = vmatprep.subr.bf16.mxu0 %v372_v0  ;;  %25 = vst.msk [vmem:[#allocation2 + $0x10] sm:$0xff] %vm22_vm0, %v372_v0  ;;  %23 = vst.msk [vmem:[#allocation2] sm:$0xff] %vm22_vm0, %v372_v0  ;;  %v362_v2 = vld [vmem:[%s483_s1 + $0x8] sm:$0xff]   ;;  %vm256_vm2 = vcmask 257024  }
   0x2   :  { %24 = vst.msk [vmem:[#allocation2 + $0x8] sm:$0xff] %vm22_vm0, %v372_v0  ;;  %26 = vst.msk [vmem:[#allocation2 + $0x18] sm:$0xff] %vm22_vm0, %v372_v0  ;;  %335 = vmatprep.mubr.msk.bf16.mxu1 %vm373_vm1, %v372_v0  ;;  %331 = vmatprep.mubr.msk.bf16.mxu0 %vm373_vm1, %v372_v0  ;;  %v363_v3 = vld [vmem:[%s483_s1 + $0x10] sm:$0xff]   ;;  %v364_v4 = vld [vmem:[%s483_s1 + $0x18] sm:$0xff]   ;;  %v205_v15 = vshrl.u32 %v204_v12, 7 }
   0x3   :  { %27 = vst.msk [vmem:[#allocation2 + $0x20] sm:$0xff] %vm22_vm0, %v372_v0  ;;  %28 = vst.msk [vmem:[#allocation2 + $0x28] sm:$0xff] %vm22_vm0, %v372_v0  ;;  %351 = vmatpush3.bf16.msra.mxu1 %v361_v1  ;;  %316 = vmatpush3.bf16.msra.mxu0 %v361_v1  ;;  %v365_v5 = vld [vmem:[%s483_s1 + $0x20] sm:$0xff]   ;;  %v366_v6 = vld [vmem:[%s483_s1 + $0x28] sm:$0xff]  }
   0x4   :  { %344 = vmatprep.subr.bf16.mxu1 %v372_v0  ;;  %317 = vmatprep.subr.bf16.mxu0 %v372_v0  ;;  %v367_v7 = vld [vmem:[%s483_s1 + $0x30] sm:$0xff]   ;;  %v368_v8 = vld [vmem:[%s483_s1 + $0x38] sm:$0xff]   ;;  %v369_v9 = vld [vmem:[%s484_s0 + $0x8] sm:$0xff]   ;;  %v206_v28 = vsub.s32 0, %v205_v15 }
   0x5   :  { %v370_v10 = vld [vmem:[%s484_s0] sm:$0xff]   ;;  %v371_v11 = vld [vmem:[%s484_s0 + $0x10] sm:$0xff]   ;;  %v302_v33 = vld [vmem:[%s486_s3 + $0x8] sm:$0xff]  }
   0x6   :  { %v202_v17 = vld [vmem:[%s485_s2] sm:$0x1]  ;;  %v296_v39 = vunpack.c.l.bf16 %v302_v33  ;;  %v297_v44 = vunpack.c.h.bf16 %v302_v33  ;;  %v303_v58 = vld [vmem:[%s486_s3 + $0x10] sm:$0xff]  }
   0x7   :  { %352 = vmatpush3.bf16.msra.mxu1 %v362_v2  ;;  %318 = vmatpush3.bf16.msra.mxu0 %v362_v2  ;;  %v203_v27 = vunpack.c.l.bf16 %v202_v17  ;;  %v291_v34 = vld [vmem:[%s486_s3] sm:$0xff]   ;;  %v300_v1 = vunpack.c.l.bf16 %v303_v58 }
   0x8   :  { %345 = vmatprep.subr.bf16.mxu1 %v372_v0  ;;  %319 = vmatprep.subr.bf16.mxu0 %v372_v0  ;;  %v31_v13 = vld [vmem:[#allocation2 + $0x10] sm:$0xff]  ;;  %v29_v14 = vld [vmem:[#allocation2] sm:$0xff]  ;;  %v292_v40 = vunpack.c.l.bf16 %v291_v34  ;;  %v293_v49 = vunpack.c.h.bf16 %v291_v34 }
   0x9   :  { %v32_v18 = vld [vmem:[#allocation2 + $0x18] sm:$0xff]  ;;  %v30_v20 = vld [vmem:[#allocation2 + $0x8] sm:$0xff]  ;;  %v207_v36 = vrot.slane %v203_v27, %v206_v28 }
   0xa   :  { %v33_v35 = vld [vmem:[#allocation2 + $0x20] sm:$0xff]  ;;  %v34_v38 = vld [vmem:[#allocation2 + $0x28] sm:$0xff] }
   0xb   :  { %353 = vmatpush3.bf16.msra.mxu1 %v363_v3  ;;  %320 = vmatpush3.bf16.msra.mxu0 %v363_v3 }
   0xc   :  { %346 = vmatprep.subr.bf16.mxu1 %v372_v0  ;;  %321 = vmatprep.subr.bf16.mxu0 %v372_v0 }
   0xf   :  { %354 = vmatpush3.bf16.msra.mxu1 %v364_v4  ;;  %322 = vmatpush3.bf16.msra.mxu0 %v364_v4  ;;  %v301_v4 = vunpack.c.h.bf16 %v303_v58 }
  0x10   :  { %347 = vmatprep.subr.bf16.mxu1 %v372_v0  ;;  %323 = vmatprep.subr.bf16.mxu0 %v372_v0 }
  0x13   :  { %355 = vmatpush3.bf16.msra.mxu1 %v365_v5  ;;  %324 = vmatpush3.bf16.msra.mxu0 %v365_v5 }
  0x14   :  { %348 = vmatprep.subr.bf16.mxu1 %v372_v0  ;;  %325 = vmatprep.subr.bf16.mxu0 %v372_v0 }
  0x17   :  { %356 = vmatpush3.bf16.msra.mxu1 %v366_v6  ;;  %326 = vmatpush3.bf16.msra.mxu0 %v366_v6 }
  0x18   :  { %349 = vmatprep.subr.bf16.mxu1 %v372_v0  ;;  %327 = vmatprep.subr.bf16.mxu0 %v372_v0 }
  0x1b   :  { %357 = vmatpush3.bf16.msra.mxu1 %v367_v7  ;;  %328 = vmatpush3.bf16.msra.mxu0 %v367_v7 }
  0x1c   :  { %350 = vmatprep.subr.bf16.mxu1 %v372_v0  ;;  %329 = vmatprep.subr.bf16.mxu0 %v372_v0 }
  0x1f   :  { %358 = vmatpush3.bf16.msra.mxu1 %v368_v8  ;;  %330 = vmatpush3.bf16.msra.mxu0 %v368_v8 }
  0x22   :  { %336 = vmatmul.mubr.bf16.vlgmr.msra.gmra.mrb[0].mxu1 %v369_v9  ;;  %332 = vmatmul.mubr.bf16.vlgmr.msra.gmra.mrb[0].mxu0 %v370_v10 }
  0x23   :  { %339 = vmatprep.mubr.msk.bf16.mxu1 %vm373_vm1, %v372_v0 }
  0x2a   :  { %340 = vmatmul.mubr.bf16.gmra.mrb[4].mxu1 %v371_v11 }
  0xf5   :  { %v165_v16 = vpop.f32.mrb[0].mxu1  ;;  %v157_v19 = vpop.f32.mrb[0].mxu0 }
  0xf6   :  { %v182_v21 = vadd.f32 %v165_v16, %v31_v13  ;;  %v337_v22 = vpop.f32.mrb[1].mxu1  ;;  %v180_v23 = vadd.f32 %v157_v19, %v29_v14  ;;  %v333_v24 = vpop.f32.mrb[1].mxu0 }
  0xf7   :  { %v168_v25 = vpop.f32.mrb[2].mxu1  ;;  %v160_v26 = vpop.f32.mrb[2].mxu0 }
  0xf8   :  { %189 = vst.msk [vmem:[#allocation2 + $0x10] sm:$0xff] %vm22_vm0, %v182_v21  ;;  %v183_v29 = vadd.f32 %v168_v25, %v32_v18  ;;  %v338_v30 = vpop.f32.mrb[3].mxu1  ;;  %187 = vst.msk [vmem:[#allocation2] sm:$0xff] %vm22_vm0, %v180_v23  ;;  %v181_v31 = vadd.f32 %v160_v26, %v30_v20  ;;  %v334_v32 = vpop.f32.mrb[3].mxu0 }
  0xfa   :  { %190 = vst.msk [vmem:[#allocation2 + $0x18] sm:$0xff] %vm22_vm0, %v183_v29  ;;  %188 = vst.msk [vmem:[#allocation2 + $0x8] sm:$0xff] %vm22_vm0, %v181_v31 }
  0xfd   :  { %v173_v37 = vpop.f32.mrb[4].mxu1 }
  0xfe   :  { %v184_v41 = vadd.f32 %v173_v37, %v33_v35  ;;  %v341_v42 = vpop.f32.mrb[5].mxu1 }
  0xff   :  { %v198_v43 = vld [vmem:[#allocation2 + $0x10] sm:$0xff]  ;;  %v196_v45 = vld [vmem:[#allocation2] sm:$0xff]  ;;  %v176_v46 = vpop.f32.mrb[6].mxu1 }
 0x100   :  { %v210_v47 = vadd.f32 %v207_v36, %v198_v43  ;;  %v208_v48 = vadd.f32 %v207_v36, %v196_v45  ;;  %191 = vst.msk [vmem:[#allocation2 + $0x20] sm:$0xff] %vm22_vm0, %v184_v41  ;;  %v185_v50 = vadd.f32 %v176_v46, %v34_v38  ;;  %v342_v51 = vpop.f32.mrb[7].mxu1 }
 0x101   :  { %v199_v52 = vld [vmem:[#allocation2 + $0x18] sm:$0xff]  ;;  %v197_v53 = vld [vmem:[#allocation2 + $0x8] sm:$0xff] }
 0x102   :  { %v228_v54 = vadd.f32 %v296_v39, %v210_v47  ;;  %v211_v55 = vadd.f32 %v207_v36, %v199_v52  ;;  %v226_v56 = vadd.f32 %v292_v40, %v208_v48  ;;  %v209_v57 = vadd.f32 %v207_v36, %v197_v53  ;;  %192 = vst.msk [vmem:[#allocation2 + $0x28] sm:$0xff] %vm22_vm0, %v185_v50 }
 0x104   :  { %v286_v59 = vpack.c.bf16 %v228_v54, %v228_v54  ;;  %v229_v60 = vadd.f32 %v297_v44, %v211_v55  ;;  %v284_v61 = vpack.c.bf16 %v226_v56, %v226_v56  ;;  %v227_v62 = vadd.f32 %v293_v49, %v209_v57 }
 0x106   :  { %259 = vst.msk [vmem:[%s487_s4 + $0x8] sm:$0xf] %vm256_vm2, %v286_v59  ;;  %v287_v63 = vpack.c.bf16 %v229_v60, %v229_v60  ;;  %257 = vst.msk [vmem:[%s487_s4] sm:$0xf] %vm256_vm2, %v284_v61  ;;  %v285_v0 = vpack.c.bf16 %v227_v62, %v227_v62 }
 0x107   :  { %v200_v2 = vld [vmem:[#allocation2 + $0x20] sm:$0xff] }
 0x108   :  { %260 = vst.msk [vmem:[%s487_s4 + $0xc] sm:$0xf] %vm256_vm2, %v287_v63  ;;  %258 = vst.msk [vmem:[%s487_s4 + $0x4] sm:$0xf] %vm256_vm2, %v285_v0  ;;  %v212_v3 = vadd.f32 %v207_v36, %v200_v2 }
 0x109   :  { %v201_v5 = vld [vmem:[#allocation2 + $0x28] sm:$0xff] }
 0x10a   :  { %v230_v6 = vadd.f32 %v300_v1, %v212_v3  ;;  %v213_v7 = vadd.f32 %v207_v36, %v201_v5 }
 0x10c   :  { %v288_v8 = vpack.c.bf16 %v230_v6, %v230_v6  ;;  %v231_v9 = vadd.f32 %v301_v4, %v213_v7 }
 0x10e   :  { %261 = vst.msk [vmem:[%s487_s4 + $0x10] sm:$0xf] %vm256_vm2, %v288_v8  ;;  %v289_v10 = vpack.c.bf16 %v231_v9, %v231_v9 }
 0x110   :  { %262 = vst.msk [vmem:[%s487_s4 + $0x14] sm:$0xf] %vm256_vm2, %v289_v10 }

// kernel: vit_forward.16
= control target key start
LH: loop header
LB: loop body
LE: loop exit
PB: predicated region body
PF: predicated region fallthrough
CT: control target
= control target key end

     0   :  { %vm37_vm0 = vcmask 261120   ;;  %v404_v46 = vmov 0.0   ;;  %vm405_vm1 = vmmov 0   ;;  %v119_v53 = vlaneseq  ;;  %s527_s0 = inlined_call_operand.vmem [shape: bf16[48,32], index: 0, kind: input, shape index: {}]   ;;  %s528_s3 = inlined_call_operand.vmem [shape: bf16[32,128], index: 3, kind: input, shape index: {}]   ;;  %s529_s1 = inlined_call_operand.vmem [shape: bf16[1,32], index: 1, kind: input, shape index: {}]   ;;  %s530_s2 = inlined_call_operand.vmem [shape: bf16[1,32], index: 2, kind: input, shape index: {}]   ;;  %s531_s4 = inlined_call_operand.vmem [shape: bf16[1,128], index: 4, kind: input, shape index: {}]   ;;  %s532_s5 = inlined_call_operand.vmem [shape: bf16[48,128], index: 5, kind: output, shape index: {}]  }
   0x1   :  { %v347_v0 = vld [vmem:[%s527_s0 + $0x8] sm:$0xff]   ;;  %v321_v1 = vld [vmem:[%s527_s0] sm:$0xff]   ;;  %v348_v5 = vld [vmem:[%s527_s0 + $0x10] sm:$0xff]   ;;  %372 = vmatprep.subr.bf16.mxu1 %v404_v46  ;;  %356 = vmatprep.subr.bf16.mxu0 %v404_v46 }
   0x2   :  { %v326_v2 = vunpack.c.l.bf16 %v347_v0  ;;  %v327_v3 = vunpack.c.h.bf16 %v347_v0  ;;  %v322_v4 = vunpack.c.l.bf16 %v321_v1  ;;  %v323_v6 = vunpack.c.h.bf16 %v321_v1  ;;  %v378_v45 = vld [vmem:[%s528_s3] sm:$0xff]   ;;  %v379_v47 = vld [vmem:[%s528_s3 + $0x8] sm:$0xff]   ;;  %364 = vmatprep.mubr.msk.bf16.mxu1 %vm405_vm1, %v404_v46  ;;  %360 = vmatprep.mubr.msk.bf16.mxu0 %vm405_vm1, %v404_v46 }
   0x3   :  { %v330_v10 = vunpack.c.l.bf16 %v348_v5  ;;  %v331_v12 = vunpack.c.h.bf16 %v348_v5  ;;  %374 = vmatpush3.bf16.msra.mxu1 %v378_v45  ;;  %357 = vmatpush3.bf16.msra.mxu0 %v378_v45  ;;  %v120_v60 = vshrl.u32 %v119_v53, 7  ;;  %v117_v63 = vld [vmem:[%s529_s1] sm:$0x1] }
   0x4   :  { %v44_v7 = vsel %vm37_vm0, %v326_v2, 0.0  ;;  %v38_v8 = vsel %vm37_vm0, %v322_v4, 0.0  ;;  %v47_v9 = vsel %vm37_vm0, %v327_v3, 0.0  ;;  %v41_v11 = vsel %vm37_vm0, %v323_v6, 0.0  ;;  %373 = vmatprep.subr.bf16.mxu1 %v404_v46  ;;  %358 = vmatprep.subr.bf16.mxu0 %v404_v46 }
   0x5   :  { %45 = vadd.xlane.f32.xlu0 %v44_v7  ;;  %39 = vadd.xlane.f32.xlu1 %v38_v8  ;;  %v50_v13 = vsel %vm37_vm0, %v330_v10, 0.0  ;;  %v53_v14 = vsel %vm37_vm0, %v331_v12, 0.0 }
   0x7   :  { %375 = vmatpush3.bf16.msra.mxu1 %v379_v47  ;;  %359 = vmatpush3.bf16.msra.mxu0 %v379_v47 }
   0x9   :  { %48 = vadd.xlane.f32.xlu0 %v47_v9  ;;  %42 = vadd.xlane.f32.xlu1 %v41_v11 }
   0xd   :  { %51 = vadd.xlane.f32.xlu0 %v50_v13  ;;  %54 = vadd.xlane.f32.xlu1 %v53_v14 }
  0x92   :  { %v46_v15 = vpop.xlane.xlu0 %45  ;;  %v40_v16 = vpop.xlane.xlu1 %39 }
  0x93   :  { %v59_v17 = vmul.f32 0.03125, %v46_v15  ;;  %v57_v18 = vmul.f32 0.03125, %v40_v16 }
  0x95   :  { %v451_v19 = vsub.f32 %v326_v2, %v59_v17  ;;  %v453_v20 = vsub.f32 %v322_v4, %v57_v18  ;;  %v121_v4 = vsub.s32 0, %v120_v60 }
  0x96   :  { %v49_v21 = vpop.xlane.xlu0 %48  ;;  %v43_v22 = vpop.xlane.xlu1 %42 }
  0x97   :  { %v60_v23 = vmul.f32 0.03125, %v49_v21  ;;  %v71_v24 = vmul.f32 %v451_v19, %v451_v19  ;;  %v58_v25 = vmul.f32 0.03125, %v43_v22  ;;  %v69_v26 = vmul.f32 %v453_v20, %v453_v20 }
  0x99   :  { %v459_v27 = vsub.f32 %v327_v3, %v60_v23  ;;  %v81_v28 = vsel %vm37_vm0, %v71_v24, 0.0  ;;  %v462_v29 = vsub.f32 %v323_v6, %v58_v25  ;;  %v75_v31 = vsel %vm37_vm0, %v69_v26, 0.0  ;;  %v129_v6 = vld [vmem:[%s530_s2] sm:$0x1] }
  0x9a   :  { %82 = vadd.xlane.f32.xlu0 %v81_v28  ;;  %v52_v30 = vpop.xlane.xlu0 %51  ;;  %v55_v32 = vpop.xlane.xlu1 %54  ;;  %v118_v3 = vunpack.c.l.bf16 %v117_v63 }
  0x9b   :  { %v61_v33 = vmul.f32 0.03125, %v52_v30  ;;  %v72_v34 = vmul.f32 %v459_v27, %v459_v27  ;;  %v62_v35 = vmul.f32 0.03125, %v55_v32  ;;  %v70_v36 = vmul.f32 %v462_v29, %v462_v29 }
  0x9c   :  { %v122_v9 = vrot.slane %v118_v3, %v121_v4 }
  0x9d   :  { %v469_v37 = vsub.f32 %v330_v10, %v61_v33  ;;  %v84_v38 = vsel %vm37_vm0, %v72_v34, 0.0  ;;  %v472_v39 = vsub.f32 %v331_v12, %v62_v35  ;;  %v78_v41 = vsel %vm37_vm0, %v70_v36, 0.0 }
  0x9e   :  { %85 = vadd.xlane.f32.xlu1 %v84_v38  ;;  %76 = vadd.xlane.f32.xlu0 %v75_v31  ;;  %v130_v10 = vunpack.c.l.bf16 %v129_v6 }
  0x9f   :  { %v73_v40 = vmul.f32 %v469_v37, %v469_v37  ;;  %v74_v42 = vmul.f32 %v472_v39, %v472_v39 }
  0xa0   :  { %v134_v14 = vrot.slane %v130_v10, %v121_v4 }
  0xa1   :  { %v87_v43 = vsel %vm37_vm0, %v73_v40, 0.0  ;;  %v90_v44 = vsel %vm37_vm0, %v74_v42, 0.0 }
  0xa2   :  { %88 = vadd.xlane.f32.xlu0 %v87_v43  ;;  %79 = vadd.xlane.f32.xlu1 %v78_v41  ;;  %v154_v41 = vld [vmem:[%s531_s4] sm:$0x1] }
  0xa3   :  { %v155_v42 = vunpack.c.l.bf16 %v154_v41 }
  0xa5   :  { %v159_v43 = vrot.slane %v155_v42, %v121_v4 }
  0xa6   :  { %91 = vadd.xlane.f32.xlu1 %v90_v44 }
 0x127   :  { %v83_v48 = vpop.xlane.xlu0 %82 }
 0x128   :  { %v95_v49 = vmul.f32 0.03125, %v83_v48 }
 0x12a   :  { %v101_v50 = vadd.f32 1e-06, %v95_v49 }
 0x12b   :  { %v77_v51 = vpop.xlane.xlu0 %76  ;;  %v86_v52 = vpop.xlane.xlu1 %85 }
 0x12c   :  { %380 = vrsqrt.f32 %v101_v50  ;;  %v93_v54 = vmul.f32 0.03125, %v77_v51  ;;  %v96_v55 = vmul.f32 0.03125, %v86_v52 }
 0x12e   :  { %v99_v56 = vadd.f32 1e-06, %v93_v54  ;;  %v102_v57 = vadd.f32 1e-06, %v96_v55 }
 0x12f   :  { %v89_v58 = vpop.xlane.xlu0 %88  ;;  %v80_v59 = vpop.xlane.xlu1 %79 }
 0x130   :  { %382 = vrsqrt.f32 %v99_v56  ;;  %v97_v61 = vmul.f32 0.03125, %v89_v58  ;;  %v94_v62 = vmul.f32 0.03125, %v80_v59 }
 0x131   :  { %384 = vrsqrt.f32 %v102_v57 }
 0x132   :  { %v103_v0 = vadd.f32 1e-06, %v97_v61  ;;  %v100_v1 = vadd.f32 1e-06, %v94_v62 }
 0x133   :  { %v92_v2 = vpop.xlane.xlu1 %91 }
 0x134   :  { %386 = vrsqrt.f32 %v103_v0  ;;  %v98_v5 = vmul.f32 0.03125, %v92_v2 }
 0x135   :  { %388 = vrsqrt.f32 %v100_v1 }
 0x136   :  { %v381_v7 = vpop.eup %380  ;;  %v104_v8 = vadd.f32 1e-06, %v98_v5 }
 0x137   :  { %v113_v11 = vmul.f32 %v381_v7, %v451_v19 }
 0x138   :  { %390 = vrsqrt.f32 %v104_v8 }
 0x139   :  { %v125_v15 = vmul.f32 %v122_v9, %v113_v11 }
 0x13a   :  { %v383_v12 = vpop.eup %382 }
 0x13b   :  { %v385_v13 = vpop.eup %384  ;;  %v111_v16 = vmul.f32 %v383_v12, %v453_v20  ;;  %v137_v24 = vadd.f32 %v134_v14, %v125_v15 }
 0x13c   :  { %v114_v17 = vmul.f32 %v385_v13, %v459_v27 }
 0x13d   :  { %v123_v25 = vmul.f32 %v122_v9, %v111_v16 }
 0x13e   :  { %v387_v18 = vpop.eup %386  ;;  %v126_v21 = vmul.f32 %v122_v9, %v114_v17 }
 0x13f   :  { %v389_v22 = vpop.eup %388  ;;  %v115_v23 = vmul.f32 %v387_v18, %v469_v37  ;;  %v135_v34 = vadd.f32 %v134_v14, %v123_v25 }
 0x140   :  { %v138_v26 = vadd.f32 %v134_v14, %v126_v21  ;;  %v112_v28 = vmul.f32 %v389_v22, %v462_v29 }
 0x141   :  { %v127_v32 = vmul.f32 %v122_v9, %v115_v23 }
 0x142   :  { %v391_v19 = vpop.eup %390  ;;  %v142_v30 = vpack.c.bf16 %v138_v26, %v137_v24  ;;  %v124_v31 = vmul.f32 %v122_v9, %v112_v28 }
 0x143   :  { %v116_v33 = vmul.f32 %v391_v19, %v472_v39  ;;  %v139_v36 = vadd.f32 %v134_v14, %v127_v32 }
 0x144   :  { %145 = vst.msk [vmem:[#allocation2 + $0x8] sm:$0xff] %vm37_vm0, %v142_v30  ;;  %v136_v20 = vadd.f32 %v134_v14, %v124_v31 }
 0x145   :  { %v128_v27 = vmul.f32 %v122_v9, %v116_v33 }
 0x146   :  { %v141_v35 = vpack.c.bf16 %v136_v20, %v135_v34 }
 0x147   :  { %v140_v38 = vadd.f32 %v134_v14, %v128_v27 }
 0x148   :  { %144 = vst.msk [vmem:[#allocation2] sm:$0xff] %vm37_vm0, %v141_v35 }
 0x149   :  { %v143_v37 = vpack.c.bf16 %v140_v38, %v139_v36 }
 0x14b   :  { %146 = vst.msk [vmem:[#allocation2 + $0x10] sm:$0xff] %vm37_vm0, %v143_v37  ;;  %v148_v29 = vld [vmem:[#allocation2 + $0x8] sm:$0xff] }
 0x14c   :  { %365 = vmatmul.mubr.msk.bf16.vlgmr.msra.gmra.mrb[0].mxu1 %vm37_vm0, %v148_v29 }
 0x14d   :  { %368 = vmatprep.mubr.msk.bf16.mxu1 %vm405_vm1, %v404_v46 }
 0x14f   :  { %v147_v39 = vld [vmem:[#allocation2] sm:$0xff] }
 0x150   :  { %361 = vmatmul.mubr.msk.bf16.vlgmr.msra.gmra.mrb[0].mxu0 %vm37_vm0, %v147_v39 }
 0x152   :  { %v149_v40 = vld [vmem:[#allocation2 + $0x10] sm:$0xff] }
 0x154   :  { %369 = vmatmul.mubr.msk.bf16.gmra.mrb[4].mxu1 %vm37_vm0, %v149_v40 }
 0x21f   :  { %v224_v44 = vpop.f32.mrb[0].mxu1 }
 0x220   :  { %v225_v45 = vadd.f32 %v224_v44, %v159_v43  ;;  %v366_v47 = vpop.f32.mrb[1].mxu1 }
 0x221   :  { %v227_v48 = vpop.f32.mrb[2].mxu1 }
 0x222   :  { %v247_v49 = vmul.f32 0.70710677, %v225_v45  ;;  %v228_v50 = vadd.f32 %v227_v48, %v159_v43  ;;  %v367_v51 = vpop.f32.mrb[3].mxu1  ;;  %v241_v7 = vmul.f32 0.5, %v225_v45 }
 0x223   :  { %v216_v46 = vpop.f32.mrb[0].mxu0 }
 0x224   :  { %392 = verf.f32 %v247_v49  ;;  %v248_v52 = vmul.f32 0.70710677, %v228_v50  ;;  %v217_v53 = vadd.f32 %v216_v46, %v159_v43  ;;  %v362_v54 = vpop.f32.mrb[1].mxu0  ;;  %v242_v8 = vmul.f32 0.5, %v228_v50 }
 0x225   :  { %v219_v55 = vpop.f32.mrb[2].mxu0 }
 0x226   :  { %394 = verf.f32 %v248_v52  ;;  %v245_v56 = vmul.f32 0.70710677, %v217_v53  ;;  %v220_v57 = vadd.f32 %v219_v55, %v159_v43  ;;  %v363_v58 = vpop.f32.mrb[3].mxu0  ;;  %v239_v16 = vmul.f32 0.5, %v217_v53 }
 0x227   :  { %v232_v59 = vpop.f32.mrb[4].mxu1 }
 0x228   :  { %396 = verf.f32 %v245_v56  ;;  %v246_v60 = vmul.f32 0.70710677, %v220_v57  ;;  %v233_v61 = vadd.f32 %v232_v59, %v159_v43  ;;  %v370_v62 = vpop.f32.mrb[5].mxu1  ;;  %v240_v17 = vmul.f32 0.5, %v220_v57 }
 0x229   :  { %v235_v63 = vpop.f32.mrb[6].mxu1 }
 0x22a   :  { %398 = verf.f32 %v246_v60  ;;  %v249_v0 = vmul.f32 0.70710677, %v233_v61  ;;  %v236_v1 = vadd.f32 %v235_v63, %v159_v43  ;;  %v371_v2 = vpop.f32.mrb[7].mxu1  ;;  %v243_v28 = vmul.f32 0.5, %v233_v61 }
 0x22c   :  { %400 = verf.f32 %v249_v0  ;;  %v250_v3 = vmul.f32 0.70710677, %v236_v1  ;;  %v244_v19 = vmul.f32 0.5, %v236_v1 }
 0x22e   :  { %v393_v4 = vpop.eup %392  ;;  %402 = verf.f32 %v250_v3 }
 0x22f   :  { %v259_v5 = vadd.f32 1.0, %v393_v4 }
 0x230   :  { %v395_v6 = vpop.eup %394 }
 0x231   :  { %v260_v9 = vadd.f32 1.0, %v395_v6  ;;  %v265_v11 = vmul.f32 %v259_v5, %v241_v7 }
 0x232   :  { %v397_v10 = vpop.eup %396 }
 0x233   :  { %v266_v12 = vmul.f32 %v260_v9, %v242_v8  ;;  %v257_v13 = vadd.f32 1.0, %v397_v10 }
 0x234   :  { %v399_v14 = vpop.eup %398 }
 0x235   :  { %v340_v15 = vpack.c.bf16 %v266_v12, %v265_v11  ;;  %v258_v18 = vadd.f32 1.0, %v399_v14  ;;  %v263_v22 = vmul.f32 %v257_v13, %v239_v16 }
 0x236   :  { %v401_v21 = vpop.eup %400 }
 0x237   :  { %349 = vst [vmem:[%s532_s5 + $0x8] sm:$0xff] %v340_v15   ;;  %v264_v23 = vmul.f32 %v258_v18, %v240_v17  ;;  %v261_v24 = vadd.f32 1.0, %v401_v21 }
 0x238   :  { %v403_v25 = vpop.eup %402 }
 0x239   :  { %v335_v26 = vpack.c.bf16 %v264_v23, %v263_v22  ;;  %v262_v30 = vadd.f32 1.0, %v403_v25  ;;  %v267_v31 = vmul.f32 %v261_v24, %v243_v28 }
 0x23b   :  { %336 = vst [vmem:[%s532_s5] sm:$0xff] %v335_v26   ;;  %v268_v32 = vmul.f32 %v262_v30, %v244_v19 }
 0x23d   :  { %v345_v33 = vpack.c.bf16 %v268_v32, %v267_v31 }
 0x23f   :  { %350 = vst [vmem:[%s532_s5 + $0x10] sm:$0xff] %v345_v33  }

// kernel: vit_forward.23
= control target key start
LH: loop header
LB: loop body
LE: loop exit
PB: predicated region body
PF: predicated region fallthrough
CT: control target
= control target key end

     0   :  { %vm28_vm0 = vcmask 254976   ;;  %s251_s0 = inlined_call_operand.vmem [shape: bf16[2,32], index: 0, kind: input, shape index: {}]   ;;  %s252_s1 = inlined_call_operand.vmem [shape: bf16[1,32], index: 1, kind: input, shape index: {}]   ;;  %s253_s2 = inlined_call_operand.vmem [shape: bf16[1,32], index: 2, kind: input, shape index: {}]   ;;  %s254_s3 = inlined_call_operand.vmem [shape: bf16[32,5], index: 3, kind: input, shape index: {}]   ;;  %s255_s4 = inlined_call_operand.vmem [shape: bf16[1,5], index: 4, kind: input, shape index: {}]   ;;  %s256_s5 = inlined_call_operand.hbm [shape: f32[2,5], index: 5, kind: output, shape index: {}]  }
   0x1   :  { %v26_v0 = vld [vmem:[%s251_s0] sm:$0x1] }
   0x2   :  { %v27_v1 = vunpack.c.l.bf16 %v26_v0 }
   0x3   :  { %10 = vsyncpa [#allocation4], 0  ;;  %v160_v8 = vld [vmem:[%s254_s3] sm:$0xff]   ;;  %v188_v9 = vmov 0.0   ;;  %v161_v10 = vld [vmem:[%s254_s3 + $0x8] sm:$0xff]   ;;  %vm189_vm1 = vmmov 0   ;;  %v45_v13 = vlaneseq }
   0x4   :  { %v29_v2 = vsel %vm28_vm0, %v27_v1, 0.0  ;;  %149 = vmatprep.subr.bf16.mxu0 %v188_v9  ;;  %153 = vmatprep.mubr.msk.bf16.mxu0 %vm189_vm1, %v188_v9  ;;  %v43_v16 = vld [vmem:[%s252_s1] sm:$0x1]  ;;  %vm58_vm2 = vcmask 253952   ;;  %vm83_vm3 = vcmask 261120   ;;  %vm127_vm4 = vcmask 33792  }
   0x5   :  { %30 = vadd.xlane.f32.xlu0 %v29_v2  ;;  %150 = vmatpush3.bf16.msra.mxu0 %v160_v8  ;;  %v46_v15 = vshrl.u32 %v45_v13, 7  ;;  %v50_v17 = vld [vmem:[%s253_s2] sm:$0x1]  ;;  %v44_v18 = vunpack.c.l.bf16 %v43_v16  ;;  %s190_s2 = smov [#allocation3]  }
   0x6   :  { %151 = vmatprep.subr.bf16.mxu0 %v188_v9  ;;  %v51_v20 = vunpack.c.l.bf16 %v50_v17  ;;  %v65_v29 = vld [vmem:[%s255_s4] sm:$0x1]  ;;  %s135_s27 = sshll.u32 %s190_s2, 4  ;;  %s136_s27 = int_to_ptr.vmem [resolvable:$true] %s135_s27 }
   0x7   :  { %v47_v19 = vsub.s32 0, %v46_v15  ;;  %v66_v30 = vunpack.c.l.bf16 %v65_v29  ;;  %s164_s28 = scalar_lea.vmem %s136_s27, 32  ;;  %p169_p1 = scmp.lt.s32.totalorder %s136_s27, %s136_s27 }
   0x8   :  { %p165_p0 = scmp.ne.s32.totalorder %s136_s27, %s164_s28  ;;  %p170_p2 = scmp.lt.s32.totalorder %s164_s28, %s164_s28 }
   0x9   :  { %152 = vmatpush3.bf16.msra.mxu0 %v161_v10  ;;  %v48_v21 = vrot.slane %v44_v18, %v47_v19  ;;  %v55_v23 = vrot.slane %v51_v20, %v47_v19  ;;  %v70_v31 = vrot.slane %v66_v30, %v47_v19 }
   0xa   :  { %p171_p3 = por %p170_p2, %p169_p1 }
   0xc   :  { %p172_p4 = pnand %p171_p3, %p165_p0 }
  0x92   :  { %v31_v3 = vpop.xlane.xlu0 %30 }
  0x93   :  { %v33_v4 = vmul.f32 0.03125, %v31_v3 }
  0x95   :  { %v34_v5 = vsub.f32 %v27_v1, %v33_v4 }
  0x97   :  { %v35_v6 = vmul.f32 %v34_v5, %v34_v5 }
  0x99   :  { %v36_v7 = vsel %vm28_vm0, %v35_v6, 0.0 }
  0x9a   :  { %37 = vadd.xlane.f32.xlu0 %v36_v7 }
 0x127   :  { %v38_v11 = vpop.xlane.xlu0 %37 }
 0x128   :  { %v39_v12 = vmul.f32 0.03125, %v38_v11 }
 0x12a   :  { %v40_v14 = vadd.f32 1e-06, %v39_v12 }
 0x12c   :  { %162 = vrsqrt.f32 %v40_v14 }
 0x136   :  { %v163_v22 = vpop.eup %162 }
 0x137   :  { %v42_v24 = vmul.f32 %v163_v22, %v34_v5 }
 0x139   :  { %v49_v25 = vmul.f32 %v48_v21, %v42_v24 }
 0x13b   :  { %v56_v26 = vadd.f32 %v55_v23, %v49_v25 }
 0x13d   :  { %v57_v27 = vpack.c.bf16 %v56_v26, %v56_v26 }
 0x13f   :  { %59 = vst.msk [vmem:[#allocation2] sm:$0x1] %vm58_vm2, %v57_v27 }
 0x146   :  { %v60_v28 = vld [vmem:[#allocation2] sm:$0x1] }
 0x147   :  { %154 = vmatmul.mubr.msk.bf16.vlgmr.msra.gmra.mrb[0].mxu0 %vm83_vm3, %v60_v28 }
 0x21a   :  { %v121_v32 = vpop.f32.mrb[0].mxu0 }
 0x21b   :  { %v122_v33 = vadd.f32 %v121_v32, %v70_v31  ;;  %v155_v34 = vpop.f32.mrb[1].mxu0 }
 0x21c   :  { %v124_v35 = vpop.f32.mrb[2].mxu0 }
 0x21d   :  { %v156_v36 = vpop.f32.mrb[3].mxu0  ;;  %128 = vst.msk [vmem:[#allocation3] sm:$0x3] %vm127_vm4, %v122_v33 }
 0x21e   :  { %175 = shalt.err (!%p172_p4)
}
 0x21f   :  { %s176_s30 = scalar_lea.hbm %s256_s5, 32 }
 0x220   :  { %p177_p5 = scmp.ne.s32.totalorder %s256_s5, %s176_s30  ;;  %p180_p6 = scmp.lt.u32.totalorder %s176_s30, %s256_s5 }
 0x222   :  { %p182_p7 = pnand %p180_p6, %p177_p5 }
 0x224   :  { %185 = shalt.err (!%p182_p7)
}
 0x225   :  { %138 = dma.vmem_to_hbm [thread:$0]  %s136_s27, 32, %s256_s5, [#allocation4]  }
 0x226   :  { %186 = dma.done.wait [#allocation4], 32  }
 0x227   :  { %187 = vsyncadd [#allocation4], 4294967264 }
 0x228   :  { %142 = vsyncpa [#allocation4], 1 }

</bundles_post_ra>
